<compile_context>
chip_gen: v6e
topology: v6e:2x2x1
jax: 0.10.0
libtpu: 0.0.40
codegen_flags: <defaults>
</compile_context>

<pallas_src>
import functools
import math

import jax
import jax.numpy as jnp
from jax import lax
from jax.experimental import pallas as pl
from jax.experimental.pallas import tpu as pltpu


def _flash_attn_kernel(*refs, scale, heads_per_block, has_mask):
    """Online-softmax attention for one (batch, head-group, q-tile) block.

    Grid: (B, H // hg, S // tq, S // tk); the kv axis (3) is the innermost
    reduction axis; m/l/acc persist in VMEM scratch across kv steps.
    """
    if has_mask:
        q_ref, k_ref, v_ref, mask_ref = refs[:4]
        o_ref, m_sc, l_sc, acc_sc = refs[4:]
    else:
        q_ref, k_ref, v_ref = refs[:3]
        o_ref, m_sc, l_sc, acc_sc = refs[3:]
        mask_ref = None

    ki = pl.program_id(3)

    @pl.when(ki == 0)
    def _init():
        m_sc[...] = jnp.full_like(m_sc, -jnp.inf)
        l_sc[...] = jnp.zeros_like(l_sc)
        acc_sc[...] = jnp.zeros_like(acc_sc)

    if has_mask:
        mask_tile = mask_ref[...].astype(jnp.float32)            # (tq, tk)

    for h in range(heads_per_block):                             # static unroll
        # Operands stay in the input dtype (native bf16 MXU path for bf16
        # inputs); accumulation happens in f32 via preferred_element_type.
        q = q_ref[0, :, h, :]                                    # (tq, D)
        k = k_ref[0, :, h, :]                                    # (tk, D)
        v = v_ref[0, :, h, :]                                    # (tk, D)
        # Fold 1/sqrt(head_dim) into the small q tile, not the (tq, tk) scores.
        q = q * jnp.asarray(scale, dtype=q.dtype)

        # QK^T: contract last dims of both operands (no explicit k transpose).
        s = lax.dot_general(q, k, (((1,), (1,)), ((), ())),
                            preferred_element_type=jnp.float32)  # (tq, tk) f32
        if has_mask:
            s = s + mask_tile

        m_prev = m_sc[h]                                         # (tq, 1)
        m_new = jnp.maximum(m_prev, jnp.max(s, axis=-1, keepdims=True))
        alpha = jnp.exp(m_prev - m_new)
        p = jnp.exp(s - m_new)                                   # (tq, tk) f32
        l_sc[h] = alpha * l_sc[h] + jnp.sum(p, axis=-1, keepdims=True)
        # Matches torch: softmax computed in f32, cast to the query dtype before
        # the PV matmul; PV accumulates in f32.
        acc_sc[h] = alpha * acc_sc[h] + lax.dot_general(
            p.astype(v.dtype), v, (((1,), (0,)), ((), ())),
            preferred_element_type=jnp.float32)                  # (tq, D)
        m_sc[h] = m_new

    @pl.when(ki == pl.num_programs(3) - 1)
    def _finalize():
        for h in range(heads_per_block):
            l = l_sc[h]
            # EUP reciprocal estimate (free VLIW slot) + one Newton step so the
            # normalization stays at f32-level accuracy.
            r = pl.reciprocal(l, approx=True)
            r = r * (2.0 - l * r)
            o_ref[0, :, h, :] = (acc_sc[h] * r).astype(o_ref.dtype)


def _pick_tile(s, pref, align):
    """Largest tile <= pref that divides s and is a multiple of align (else s)."""
    if s <= pref:
        return s
    t = (pref // align) * align
    while t >= align:
        if s % t == 0:
            return t
        t -= align
    return s


def attention_gear_forward(q, k, v, mask=None, *, q_tile=None, kv_tile=None):
    """Pallas equivalent of attention_gear.forward with past_key_value=None.

    q, k, v: [B, S, H, D]  (PyTorch layout before .transpose(1,2))
    mask:    additive mask broadcast over batch/heads, shape [S, S] (or
             [.., 1, S, S] with singleton leading dims), or None.
    returns: [B, S, H, D]  (== attn_output.transpose(1,2).contiguous())
    """
    B, S, H, D = q.shape
    dtype = q.dtype
    scale = 1.0 / math.sqrt(D)

    # Head-group size: trailing block dims are (hg, D); hg must be a multiple
    # of 8 or the full head count to satisfy the TPU second-minor tiling rule.
    hg = 8 if (H % 8 == 0 and H >= 8) else H
    # ~256-wide tiles: multiples of the MXU width, and the double-buffered
    # q/k/v/mask working set stays well inside scoped-VMEM on v5e/v6e/v7x.
    tq = q_tile if q_tile is not None else _pick_tile(S, 256, 8)
    tk = kv_tile if kv_tile is not None else _pick_tile(S, 256, 128)

    has_mask = mask is not None
    if has_mask:
        mask = jnp.reshape(mask, mask.shape[-2:])   # accept [..,1,S,S]-style masks

    grid = (B, H // hg, S // tq, S // tk)

    q_spec = pl.BlockSpec((1, tq, hg, D), lambda b, h, qi, ki: (b, qi, h, 0))
    kv_spec = pl.BlockSpec((1, tk, hg, D), lambda b, h, qi, ki: (b, ki, h, 0))
    out_spec = pl.BlockSpec((1, tq, hg, D), lambda b, h, qi, ki: (b, qi, h, 0))
    in_specs = [q_spec, kv_spec, kv_spec]
    operands = [q, k, v]
    if has_mask:
        in_specs.append(pl.BlockSpec((tq, tk), lambda b, h, qi, ki: (qi, ki)))
        operands.append(mask)

    kernel = functools.partial(
        _flash_attn_kernel, scale=scale, heads_per_block=hg, has_mask=has_mask)

    out = pl.pallas_call(
        kernel,
        out_shape=jax.ShapeDtypeStruct((B, S, H, D), dtype),
        grid_spec=pltpu.PrefetchScalarGridSpec(
            num_scalar_prefetch=0,
            grid=grid,
            in_specs=in_specs,
            out_specs=out_spec,
            scratch_shapes=[
                pltpu.VMEM((hg, tq, 1), jnp.float32),   # running max  m
                pltpu.VMEM((hg, tq, 1), jnp.float32),   # running sum  l
                pltpu.VMEM((hg, tq, D), jnp.float32),   # output accumulator
            ],
        ),
        compiler_params=pltpu.CompilerParams(
            dimension_semantics=("parallel", "parallel", "parallel", "arbitrary")),
    )(*operands)

    # TODO(synk): GEAR's CompressUnion (quantized + low-rank KV-cache compression
    # and past_key_value write-back) has no Pallas equivalent here; this is the
    # prefill attention path only (past_key_value=None).
    return out


def _reference(q, k, v, mask):
    B, S, H, D = q.shape
    qh = jnp.transpose(q, (0, 2, 1, 3))
    kh = jnp.transpose(k, (0, 2, 1, 3))
    vh = jnp.transpose(v, (0, 2, 1, 3))
    s = jnp.einsum("bhqd,bhkd->bhqk", qh, kh) / math.sqrt(D)
    if mask is not None:
        s = s + jnp.reshape(mask, mask.shape[-2:])[None, None]
    p = jax.nn.softmax(s.astype(jnp.float32), axis=-1).astype(q.dtype)
    o = jnp.einsum("bhqk,bhkd->bhqd", p, vh)
    return jnp.transpose(o, (0, 2, 1, 3))


if __name__ == "__main__":
    bsz, seqlen, n_heads, head_dim = 2, 8, 4, 32

    key = jax.random.PRNGKey(0)
    kq, kk, kv = jax.random.split(key, 3)
    q = jax.random.normal(kq, (bsz, seqlen, n_heads, head_dim), dtype=jnp.float32)
    k = jax.random.normal(kk, (bsz, seqlen, n_heads, head_dim), dtype=jnp.float32)
    v = jax.random.normal(kv, (bsz, seqlen, n_heads, head_dim), dtype=jnp.float32)

    # causal additive mask, like the llama prefill mask fed to this module
    neg = jnp.float32(-1e9)
    mask = jnp.where(
        jnp.arange(seqlen)[:, None] >= jnp.arange(seqlen)[None, :],
        jnp.float32(0.0), neg)

    out = attention_gear_forward(q, k, v, mask)
    jax.block_until_ready(out)
    ref = _reference(q, k, v, mask)
    assert out.shape == (bsz, seqlen, n_heads, head_dim)
    assert jnp.allclose(out, ref, atol=1e-4, rtol=1e-4), \
        float(jnp.max(jnp.abs(out - ref)))

    # mask=None path (decoding-style call) exercises the no-mask kernel variant
    out_nm = attention_gear_forward(q, k, v, None)
    jax.block_until_ready(out_nm)
    ref_nm = _reference(q, k, v, None)
    assert jnp.allclose(out_nm, ref_nm, atol=1e-4, rtol=1e-4), \
        float(jnp.max(jnp.abs(out_nm - ref_nm)))

    print("KERNEL_OK")
</pallas_src>

<mosaic_0001>
module attributes {stable_mosaic.version = 11 : i64} {
  func.func @_flash_attn_kernel(%arg0: i32, %arg1: i32, %arg2: i32, %arg3: i32, %arg4: memref<1x8x4x32xf32, #tpu.memory_space<vmem>>, %arg5: memref<1x8x4x32xf32, #tpu.memory_space<vmem>>, %arg6: memref<1x8x4x32xf32, #tpu.memory_space<vmem>>, %arg7: memref<8x8xf32, #tpu.memory_space<vmem>>, %arg8: memref<1x8x4x32xf32, #tpu.memory_space<vmem>>, %arg9: memref<4x8x1xf32, #tpu.memory_space<vmem>>, %arg10: memref<4x8x1xf32, #tpu.memory_space<vmem>>, %arg11: memref<4x8x32xf32, #tpu.memory_space<vmem>>) attributes {dimension_semantics = [#tpu.dimension_semantics<parallel>, #tpu.dimension_semantics<parallel>, #tpu.dimension_semantics<parallel>, #tpu.dimension_semantics<arbitrary>], iteration_bounds = array<i64: 2, 1, 1, 1>, scalar_prefetch = 0 : i64, scratch_operands = 3 : i64, tpu.core_type = #tpu.core_type<tc>, window_params = [{transform_indices = @transform_0, window_bounds = array<i64: 1, 8, 4, 32>}, {transform_indices = @transform_1, window_bounds = array<i64: 1, 8, 4, 32>}, {transform_indices = @transform_2, window_bounds = array<i64: 1, 8, 4, 32>}, {transform_indices = @transform_3, window_bounds = array<i64: 8, 8>}, {transform_indices = @transform_4, window_bounds = array<i64: 1, 8, 4, 32>}]} {
    %c0_i32 = arith.constant 0 : i32
    %0 = arith.cmpi eq, %arg3, %c0_i32 : i32
    %1 = arith.extui %0 : i1 to i32
    %c0_i32_0 = arith.constant 0 : i32
    %2 = arith.cmpi ne, %1, %c0_i32_0 : i32
    scf.if %2 {
      %cst_140 = arith.constant 0xFF800000 : f32
      %171 = vector.broadcast %cst_140 : f32 to vector<4x8x1xf32>
      %c0_141 = arith.constant 0 : index
      %c0_142 = arith.constant 0 : index
      %c0_143 = arith.constant 0 : index
      %172 = vector.load %arg9[%c0_141, %c0_142, %c0_143] : memref<4x8x1xf32, #tpu.memory_space<vmem>>, vector<4x8x1xf32>
      tpu.vector_store %arg9[%c0_141, %c0_142, %c0_143], %171 {strides = array<i32>} : memref<4x8x1xf32, #tpu.memory_space<vmem>>, vector<4x8x1xf32>,
      %cst_144 = arith.constant 0.000000e+00 : f32
      %173 = vector.broadcast %cst_144 : f32 to vector<4x8x1xf32>
      %c0_145 = arith.constant 0 : index
      %c0_146 = arith.constant 0 : index
      %c0_147 = arith.constant 0 : index
      %174 = vector.load %arg10[%c0_145, %c0_146, %c0_147] : memref<4x8x1xf32, #tpu.memory_space<vmem>>, vector<4x8x1xf32>
      tpu.vector_store %arg10[%c0_145, %c0_146, %c0_147], %173 {strides = array<i32>} : memref<4x8x1xf32, #tpu.memory_space<vmem>>, vector<4x8x1xf32>,
      %cst_148 = arith.constant 0.000000e+00 : f32
      %175 = vector.broadcast %cst_148 : f32 to vector<4x8x32xf32>
      %c0_149 = arith.constant 0 : index
      %c0_150 = arith.constant 0 : index
      %c0_151 = arith.constant 0 : index
      %176 = vector.load %arg11[%c0_149, %c0_150, %c0_151] : memref<4x8x32xf32, #tpu.memory_space<vmem>>, vector<4x8x32xf32>
      tpu.vector_store %arg11[%c0_149, %c0_150, %c0_151], %175 {strides = array<i32>} : memref<4x8x32xf32, #tpu.memory_space<vmem>>, vector<4x8x32xf32>,
    } else {
    }
    %c0 = arith.constant 0 : index
    %c0_1 = arith.constant 0 : index
    %3 = vector.load %arg7[%c0, %c0_1] : memref<8x8xf32, #tpu.memory_space<vmem>>, vector<8x8xf32>
    %c0_2 = arith.constant 0 : index
    %c0_3 = arith.constant 0 : index
    %c0_4 = arith.constant 0 : index
    %c0_5 = arith.constant 0 : index
    %4 = vector.load %arg4[%c0_2, %c0_3, %c0_4, %c0_5] : memref<1x8x4x32xf32, #tpu.memory_space<vmem>>, vector<1x8x1x32xf32>
    %5 = vector.shape_cast %4 : vector<1x8x1x32xf32> to vector<8x32xf32>
    %c0_6 = arith.constant 0 : index
    %c0_7 = arith.constant 0 : index
    %c0_8 = arith.constant 0 : index
    %c0_9 = arith.constant 0 : index
    %6 = vector.load %arg5[%c0_6, %c0_7, %c0_8, %c0_9] : memref<1x8x4x32xf32, #tpu.memory_space<vmem>>, vector<1x8x1x32xf32>
    %7 = vector.shape_cast %6 : vector<1x8x1x32xf32> to vector<8x32xf32>
    %c0_10 = arith.constant 0 : index
    %c0_11 = arith.constant 0 : index
    %c0_12 = arith.constant 0 : index
    %c0_13 = arith.constant 0 : index
    %8 = vector.load %arg6[%c0_10, %c0_11, %c0_12, %c0_13] : memref<1x8x4x32xf32, #tpu.memory_space<vmem>>, vector<1x8x1x32xf32>
    %9 = vector.shape_cast %8 : vector<1x8x1x32xf32> to vector<8x32xf32>
    %cst = arith.constant 0.176776692 : f32
    %10 = vector.broadcast %cst : f32 to vector<8x32xf32>
    %11 = arith.mulf %5, %10 : vector<8x32xf32>
    %cst_14 = arith.constant dense<0.000000e+00> : vector<8x8xf32>
    %12 = tpu.matmul %11, %7, %cst_14 {dimension_numbers = #tpu.dot_dimension_numbers<[1], [1], [0], [0], [0, 0, 1, 0], [], []>} : vector<8x32xf32>, vector<8x32xf32>, vector<8x8xf32> -> vector<8x8xf32>
    %13 = arith.addf %12, %3 : vector<8x8xf32>
    %c0_15 = arith.constant 0 : index
    %c0_16 = arith.constant 0 : index
    %c0_17 = arith.constant 0 : index
    %14 = vector.load %arg9[%c0_15, %c0_16, %c0_17] : memref<4x8x1xf32, #tpu.memory_space<vmem>>, vector<1x8x1xf32>
    %15 = vector.shape_cast %14 : vector<1x8x1xf32> to vector<8x1xf32>
    %cst_18 = arith.constant dense<0xFF800000> : vector<8xf32>
    %16 = vector.multi_reduction <maximumf>, %13, %cst_18 [1] : vector<8x8xf32> to vector<8xf32>
    %17 = vector.shape_cast %16 : vector<8xf32> to vector<8x1xf32>
    %18 = arith.maximumf %15, %17 : vector<8x1xf32>
    %19 = arith.subf %15, %18 : vector<8x1xf32>
    %20 = math.exp %19 : vector<8x1xf32>
    %21 = vector.broadcast %18 : vector<8x1xf32> to vector<8x8xf32>
    %22 = arith.subf %13, %21 : vector<8x8xf32>
    %23 = math.exp %22 : vector<8x8xf32>
    %c0_19 = arith.constant 0 : index
    %c0_20 = arith.constant 0 : index
    %c0_21 = arith.constant 0 : index
    %24 = vector.load %arg10[%c0_19, %c0_20, %c0_21] : memref<4x8x1xf32, #tpu.memory_space<vmem>>, vector<1x8x1xf32>
    %25 = vector.shape_cast %24 : vector<1x8x1xf32> to vector<8x1xf32>
    %26 = arith.mulf %20, %25 : vector<8x1xf32>
    %cst_22 = arith.constant dense<0.000000e+00> : vector<8xf32>
    %27 = vector.multi_reduction <add>, %23, %cst_22 [1] : vector<8x8xf32> to vector<8xf32>
    %28 = vector.shape_cast %27 : vector<8xf32> to vector<8x1xf32>
    %29 = arith.addf %26, %28 : vector<8x1xf32>
    %c0_23 = arith.constant 0 : index
    %c0_24 = arith.constant 0 : index
    %c0_25 = arith.constant 0 : index
    %30 = vector.load %arg10[%c0_23, %c0_24, %c0_25] : memref<4x8x1xf32, #tpu.memory_space<vmem>>, vector<1x8x1xf32>
    %31 = vector.shape_cast %30 : vector<1x8x1xf32> to vector<8x1xf32>
    %32 = vector.shape_cast %29 : vector<8x1xf32> to vector<1x8x1xf32>
    tpu.vector_store %arg10[%c0_23, %c0_24, %c0_25], %32 {strides = array<i32>} : memref<4x8x1xf32, #tpu.memory_space<vmem>>, vector<1x8x1xf32>,
    %c0_26 = arith.constant 0 : index
    %c0_27 = arith.constant 0 : index
    %c0_28 = arith.constant 0 : index
    %33 = vector.load %arg11[%c0_26, %c0_27, %c0_28] : memref<4x8x32xf32, #tpu.memory_space<vmem>>, vector<1x8x32xf32>
    %34 = vector.shape_cast %33 : vector<1x8x32xf32> to vector<8x32xf32>
    %35 = vector.broadcast %20 : vector<8x1xf32> to vector<8x32xf32>
    %36 = arith.mulf %35, %34 : vector<8x32xf32>
    %cst_29 = arith.constant dense<0.000000e+00> : vector<8x32xf32>
    %37 = tpu.matmul %23, %9, %cst_29 {dimension_numbers = #tpu.dot_dimension_numbers<[1], [0], [0], [1], [0, 0, 1, 1], [], []>} : vector<8x8xf32>, vector<8x32xf32>, vector<8x32xf32> -> vector<8x32xf32>
    %38 = arith.addf %36, %37 : vector<8x32xf32>
    %c0_30 = arith.constant 0 : index
    %c0_31 = arith.constant 0 : index
    %c0_32 = arith.constant 0 : index
    %39 = vector.load %arg11[%c0_30, %c0_31, %c0_32] : memref<4x8x32xf32, #tpu.memory_space<vmem>>, vector<1x8x32xf32>
    %40 = vector.shape_cast %39 : vector<1x8x32xf32> to vector<8x32xf32>
    %41 = vector.shape_cast %38 : vector<8x32xf32> to vector<1x8x32xf32>
    tpu.vector_store %arg11[%c0_30, %c0_31, %c0_32], %41 {strides = array<i32>} : memref<4x8x32xf32, #tpu.memory_space<vmem>>, vector<1x8x32xf32>,
    %c0_33 = arith.constant 0 : index
    %c0_34 = arith.constant 0 : index
    %c0_35 = arith.constant 0 : index
    %42 = vector.load %arg9[%c0_33, %c0_34, %c0_35] : memref<4x8x1xf32, #tpu.memory_space<vmem>>, vector<1x8x1xf32>
    %43 = vector.shape_cast %42 : vector<1x8x1xf32> to vector<8x1xf32>
    %44 = vector.shape_cast %18 : vector<8x1xf32> to vector<1x8x1xf32>
    tpu.vector_store %arg9[%c0_33, %c0_34, %c0_35], %44 {strides = array<i32>} : memref<4x8x1xf32, #tpu.memory_space<vmem>>, vector<1x8x1xf32>,
    %c0_36 = arith.constant 0 : index
    %c0_37 = arith.constant 0 : index
    %c1 = arith.constant 1 : index
    %c0_38 = arith.constant 0 : index
    %45 = vector.load %arg4[%c0_36, %c0_37, %c1, %c0_38] : memref<1x8x4x32xf32, #tpu.memory_space<vmem>>, vector<1x8x1x32xf32>
    %46 = vector.shape_cast %45 : vector<1x8x1x32xf32> to vector<8x32xf32>
    %c0_39 = arith.constant 0 : index
    %c0_40 = arith.constant 0 : index
    %c1_41 = arith.constant 1 : index
    %c0_42 = arith.constant 0 : index
    %47 = vector.load %arg5[%c0_39, %c0_40, %c1_41, %c0_42] : memref<1x8x4x32xf32, #tpu.memory_space<vmem>>, vector<1x8x1x32xf32>
    %48 = vector.shape_cast %47 : vector<1x8x1x32xf32> to vector<8x32xf32>
    %c0_43 = arith.constant 0 : index
    %c0_44 = arith.constant 0 : index
    %c1_45 = arith.constant 1 : index
    %c0_46 = arith.constant 0 : index
    %49 = vector.load %arg6[%c0_43, %c0_44, %c1_45, %c0_46] : memref<1x8x4x32xf32, #tpu.memory_space<vmem>>, vector<1x8x1x32xf32>
    %50 = vector.shape_cast %49 : vector<1x8x1x32xf32> to vector<8x32xf32>
    %cst_47 = arith.constant 0.176776692 : f32
    %51 = vector.broadcast %cst_47 : f32 to vector<8x32xf32>
    %52 = arith.mulf %46, %51 : vector<8x32xf32>
    %cst_48 = arith.constant dense<0.000000e+00> : vector<8x8xf32>
    %53 = tpu.matmul %52, %48, %cst_48 {dimension_numbers = #tpu.dot_dimension_numbers<[1], [1], [0], [0], [0, 0, 1, 0], [], []>} : vector<8x32xf32>, vector<8x32xf32>, vector<8x8xf32> -> vector<8x8xf32>
    %54 = arith.addf %53, %3 : vector<8x8xf32>
    %c1_49 = arith.constant 1 : index
    %c0_50 = arith.constant 0 : index
    %c0_51 = arith.constant 0 : index
    %55 = vector.load %arg9[%c1_49, %c0_50, %c0_51] : memref<4x8x1xf32, #tpu.memory_space<vmem>>, vector<1x8x1xf32>
    %56 = vector.shape_cast %55 : vector<1x8x1xf32> to vector<8x1xf32>
    %cst_52 = arith.constant dense<0xFF800000> : vector<8xf32>
    %57 = vector.multi_reduction <maximumf>, %54, %cst_52 [1] : vector<8x8xf32> to vector<8xf32>
    %58 = vector.shape_cast %57 : vector<8xf32> to vector<8x1xf32>
    %59 = arith.maximumf %56, %58 : vector<8x1xf32>
    %60 = arith.subf %56, %59 : vector<8x1xf32>
    %61 = math.exp %60 : vector<8x1xf32>
    %62 = vector.broadcast %59 : vector<8x1xf32> to vector<8x8xf32>
    %63 = arith.subf %54, %62 : vector<8x8xf32>
    %64 = math.exp %63 : vector<8x8xf32>
    %c1_53 = arith.constant 1 : index
    %c0_54 = arith.constant 0 : index
    %c0_55 = arith.constant 0 : index
    %65 = vector.load %arg10[%c1_53, %c0_54, %c0_55] : memref<4x8x1xf32, #tpu.memory_space<vmem>>, vector<1x8x1xf32>
    %66 = vector.shape_cast %65 : vector<1x8x1xf32> to vector<8x1xf32>
    %67 = arith.mulf %61, %66 : vector<8x1xf32>
    %cst_56 = arith.constant dense<0.000000e+00> : vector<8xf32>
    %68 = vector.multi_reduction <add>, %64, %cst_56 [1] : vector<8x8xf32> to vector<8xf32>
    %69 = vector.shape_cast %68 : vector<8xf32> to vector<8x1xf32>
    %70 = arith.addf %67, %69 : vector<8x1xf32>
    %c1_57 = arith.constant 1 : index
    %c0_58 = arith.constant 0 : index
    %c0_59 = arith.constant 0 : index
    %71 = vector.load %arg10[%c1_57, %c0_58, %c0_59] : memref<4x8x1xf32, #tpu.memory_space<vmem>>, vector<1x8x1xf32>
    %72 = vector.shape_cast %71 : vector<1x8x1xf32> to vector<8x1xf32>
    %73 = vector.shape_cast %70 : vector<8x1xf32> to vector<1x8x1xf32>
    tpu.vector_store %arg10[%c1_57, %c0_58, %c0_59], %73 {strides = array<i32>} : memref<4x8x1xf32, #tpu.memory_space<vmem>>, vector<1x8x1xf32>,
    %c1_60 = arith.constant 1 : index
    %c0_61 = arith.constant 0 : index
    %c0_62 = arith.constant 0 : index
    %74 = vector.load %arg11[%c1_60, %c0_61, %c0_62] : memref<4x8x32xf32, #tpu.memory_space<vmem>>, vector<1x8x32xf32>
    %75 = vector.shape_cast %74 : vector<1x8x32xf32> to vector<8x32xf32>
    %76 = vector.broadcast %61 : vector<8x1xf32> to vector<8x32xf32>
    %77 = arith.mulf %76, %75 : vector<8x32xf32>
    %cst_63 = arith.constant dense<0.000000e+00> : vector<8x32xf32>
    %78 = tpu.matmul %64, %50, %cst_63 {dimension_numbers = #tpu.dot_dimension_numbers<[1], [0], [0], [1], [0, 0, 1, 1], [], []>} : vector<8x8xf32>, vector<8x32xf32>, vector<8x32xf32> -> vector<8x32xf32>
    %79 = arith.addf %77, %78 : vector<8x32xf32>
    %c1_64 = arith.constant 1 : index
    %c0_65 = arith.constant 0 : index
    %c0_66 = arith.constant 0 : index
    %80 = vector.load %arg11[%c1_64, %c0_65, %c0_66] : memref<4x8x32xf32, #tpu.memory_space<vmem>>, vector<1x8x32xf32>
    %81 = vector.shape_cast %80 : vector<1x8x32xf32> to vector<8x32xf32>
    %82 = vector.shape_cast %79 : vector<8x32xf32> to vector<1x8x32xf32>
    tpu.vector_store %arg11[%c1_64, %c0_65, %c0_66], %82 {strides = array<i32>} : memref<4x8x32xf32, #tpu.memory_space<vmem>>, vector<1x8x32xf32>,
    %c1_67 = arith.constant 1 : index
    %c0_68 = arith.constant 0 : index
    %c0_69 = arith.constant 0 : index
    %83 = vector.load %arg9[%c1_67, %c0_68, %c0_69] : memref<4x8x1xf32, #tpu.memory_space<vmem>>, vector<1x8x1xf32>
    %84 = vector.shape_cast %83 : vector<1x8x1xf32> to vector<8x1xf32>
    %85 = vector.shape_cast %59 : vector<8x1xf32> to vector<1x8x1xf32>
    tpu.vector_store %arg9[%c1_67, %c0_68, %c0_69], %85 {strides = array<i32>} : memref<4x8x1xf32, #tpu.memory_space<vmem>>, vector<1x8x1xf32>,
    %c0_70 = arith.constant 0 : index
    %c0_71 = arith.constant 0 : index
    %c2 = arith.constant 2 : index
    %c0_72 = arith.constant 0 : index
    %86 = vector.load %arg4[%c0_70, %c0_71, %c2, %c0_72] : memref<1x8x4x32xf32, #tpu.memory_space<vmem>>, vector<1x8x1x32xf32>
    %87 = vector.shape_cast %86 : vector<1x8x1x32xf32> to vector<8x32xf32>
    %c0_73 = arith.constant 0 : index
    %c0_74 = arith.constant 0 : index
    %c2_75 = arith.constant 2 : index
    %c0_76 = arith.constant 0 : index
    %88 = vector.load %arg5[%c0_73, %c0_74, %c2_75, %c0_76] : memref<1x8x4x32xf32, #tpu.memory_space<vmem>>, vector<1x8x1x32xf32>
    %89 = vector.shape_cast %88 : vector<1x8x1x32xf32> to vector<8x32xf32>
    %c0_77 = arith.constant 0 : index
    %c0_78 = arith.constant 0 : index
    %c2_79 = arith.constant 2 : index
    %c0_80 = arith.constant 0 : index
    %90 = vector.load %arg6[%c0_77, %c0_78, %c2_79, %c0_80] : memref<1x8x4x32xf32, #tpu.memory_space<vmem>>, vector<1x8x1x32xf32>
    %91 = vector.shape_cast %90 : vector<1x8x1x32xf32> to vector<8x32xf32>
    %cst_81 = arith.constant 0.176776692 : f32
    %92 = vector.broadcast %cst_81 : f32 to vector<8x32xf32>
    %93 = arith.mulf %87, %92 : vector<8x32xf32>
    %cst_82 = arith.constant dense<0.000000e+00> : vector<8x8xf32>
    %94 = tpu.matmul %93, %89, %cst_82 {dimension_numbers = #tpu.dot_dimension_numbers<[1], [1], [0], [0], [0, 0, 1, 0], [], []>} : vector<8x32xf32>, vector<8x32xf32>, vector<8x8xf32> -> vector<8x8xf32>
    %95 = arith.addf %94, %3 : vector<8x8xf32>
    %c2_83 = arith.constant 2 : index
    %c0_84 = arith.constant 0 : index
    %c0_85 = arith.constant 0 : index
    %96 = vector.load %arg9[%c2_83, %c0_84, %c0_85] : memref<4x8x1xf32, #tpu.memory_space<vmem>>, vector<1x8x1xf32>
    %97 = vector.shape_cast %96 : vector<1x8x1xf32> to vector<8x1xf32>
    %cst_86 = arith.constant dense<0xFF800000> : vector<8xf32>
    %98 = vector.multi_reduction <maximumf>, %95, %cst_86 [1] : vector<8x8xf32> to vector<8xf32>
    %99 = vector.shape_cast %98 : vector<8xf32> to vector<8x1xf32>
    %100 = arith.maximumf %97, %99 : vector<8x1xf32>
    %101 = arith.subf %97, %100 : vector<8x1xf32>
    %102 = math.exp %101 : vector<8x1xf32>
    %103 = vector.broadcast %100 : vector<8x1xf32> to vector<8x8xf32>
    %104 = arith.subf %95, %103 : vector<8x8xf32>
    %105 = math.exp %104 : vector<8x8xf32>
    %c2_87 = arith.constant 2 : index
    %c0_88 = arith.constant 0 : index
    %c0_89 = arith.constant 0 : index
    %106 = vector.load %arg10[%c2_87, %c0_88, %c0_89] : memref<4x8x1xf32, #tpu.memory_space<vmem>>, vector<1x8x1xf32>
    %107 = vector.shape_cast %106 : vector<1x8x1xf32> to vector<8x1xf32>
    %108 = arith.mulf %102, %107 : vector<8x1xf32>
    %cst_90 = arith.constant dense<0.000000e+00> : vector<8xf32>
    %109 = vector.multi_reduction <add>, %105, %cst_90 [1] : vector<8x8xf32> to vector<8xf32>
    %110 = vector.shape_cast %109 : vector<8xf32> to vector<8x1xf32>
    %111 = arith.addf %108, %110 : vector<8x1xf32>
    %c2_91 = arith.constant 2 : index
    %c0_92 = arith.constant 0 : index
    %c0_93 = arith.constant 0 : index
    %112 = vector.load %arg10[%c2_91, %c0_92, %c0_93] : memref<4x8x1xf32, #tpu.memory_space<vmem>>, vector<1x8x1xf32>
    %113 = vector.shape_cast %112 : vector<1x8x1xf32> to vector<8x1xf32>
    %114 = vector.shape_cast %111 : vector<8x1xf32> to vector<1x8x1xf32>
    tpu.vector_store %arg10[%c2_91, %c0_92, %c0_93], %114 {strides = array<i32>} : memref<4x8x1xf32, #tpu.memory_space<vmem>>, vector<1x8x1xf32>,
    %c2_94 = arith.constant 2 : index
    %c0_95 = arith.constant 0 : index
    %c0_96 = arith.constant 0 : index
    %115 = vector.load %arg11[%c2_94, %c0_95, %c0_96] : memref<4x8x32xf32, #tpu.memory_space<vmem>>, vector<1x8x32xf32>
    %116 = vector.shape_cast %115 : vector<1x8x32xf32> to vector<8x32xf32>
    %117 = vector.broadcast %102 : vector<8x1xf32> to vector<8x32xf32>
    %118 = arith.mulf %117, %116 : vector<8x32xf32>
    %cst_97 = arith.constant dense<0.000000e+00> : vector<8x32xf32>
    %119 = tpu.matmul %105, %91, %cst_97 {dimension_numbers = #tpu.dot_dimension_numbers<[1], [0], [0], [1], [0, 0, 1, 1], [], []>} : vector<8x8xf32>, vector<8x32xf32>, vector<8x32xf32> -> vector<8x32xf32>
    %120 = arith.addf %118, %119 : vector<8x32xf32>
    %c2_98 = arith.constant 2 : index
    %c0_99 = arith.constant 0 : index
    %c0_100 = arith.constant 0 : index
    %121 = vector.load %arg11[%c2_98, %c0_99, %c0_100] : memref<4x8x32xf32, #tpu.memory_space<vmem>>, vector<1x8x32xf32>
    %122 = vector.shape_cast %121 : vector<1x8x32xf32> to vector<8x32xf32>
    %123 = vector.shape_cast %120 : vector<8x32xf32> to vector<1x8x32xf32>
    tpu.vector_store %arg11[%c2_98, %c0_99, %c0_100], %123 {strides = array<i32>} : memref<4x8x32xf32, #tpu.memory_space<vmem>>, vector<1x8x32xf32>,
    %c2_101 = arith.constant 2 : index
    %c0_102 = arith.constant 0 : index
    %c0_103 = arith.constant 0 : index
    %124 = vector.load %arg9[%c2_101, %c0_102, %c0_103] : memref<4x8x1xf32, #tpu.memory_space<vmem>>, vector<1x8x1xf32>
    %125 = vector.shape_cast %124 : vector<1x8x1xf32> to vector<8x1xf32>
    %126 = vector.shape_cast %100 : vector<8x1xf32> to vector<1x8x1xf32>
    tpu.vector_store %arg9[%c2_101, %c0_102, %c0_103], %126 {strides = array<i32>} : memref<4x8x1xf32, #tpu.memory_space<vmem>>, vector<1x8x1xf32>,
    %c0_104 = arith.constant 0 : index
    %c0_105 = arith.constant 0 : index
    %c3 = arith.constant 3 : index
    %c0_106 = arith.constant 0 : index
    %127 = vector.load %arg4[%c0_104, %c0_105, %c3, %c0_106] : memref<1x8x4x32xf32, #tpu.memory_space<vmem>>, vector<1x8x1x32xf32>
    %128 = vector.shape_cast %127 : vector<1x8x1x32xf32> to vector<8x32xf32>
    %c0_107 = arith.constant 0 : index
    %c0_108 = arith.constant 0 : index
    %c3_109 = arith.constant 3 : index
    %c0_110 = arith.constant 0 : index
    %129 = vector.load %arg5[%c0_107, %c0_108, %c3_109, %c0_110] : memref<1x8x4x32xf32, #tpu.memory_space<vmem>>, vector<1x8x1x32xf32>
    %130 = vector.shape_cast %129 : vector<1x8x1x32xf32> to vector<8x32xf32>
    %c0_111 = arith.constant 0 : index
    %c0_112 = arith.constant 0 : index
    %c3_113 = arith.constant 3 : index
    %c0_114 = arith.constant 0 : index
    %131 = vector.load %arg6[%c0_111, %c0_112, %c3_113, %c0_114] : memref<1x8x4x32xf32, #tpu.memory_space<vmem>>, vector<1x8x1x32xf32>
    %132 = vector.shape_cast %131 : vector<1x8x1x32xf32> to vector<8x32xf32>
    %cst_115 = arith.constant 0.176776692 : f32
    %133 = vector.broadcast %cst_115 : f32 to vector<8x32xf32>
    %134 = arith.mulf %128, %133 : vector<8x32xf32>
    %cst_116 = arith.constant dense<0.000000e+00> : vector<8x8xf32>
    %135 = tpu.matmul %134, %130, %cst_116 {dimension_numbers = #tpu.dot_dimension_numbers<[1], [1], [0], [0], [0, 0, 1, 0], [], []>} : vector<8x32xf32>, vector<8x32xf32>, vector<8x8xf32> -> vector<8x8xf32>
    %136 = arith.addf %135, %3 : vector<8x8xf32>
    %c3_117 = arith.constant 3 : index
    %c0_118 = arith.constant 0 : index
    %c0_119 = arith.constant 0 : index
    %137 = vector.load %arg9[%c3_117, %c0_118, %c0_119] : memref<4x8x1xf32, #tpu.memory_space<vmem>>, vector<1x8x1xf32>
    %138 = vector.shape_cast %137 : vector<1x8x1xf32> to vector<8x1xf32>
    %cst_120 = arith.constant dense<0xFF800000> : vector<8xf32>
    %139 = vector.multi_reduction <maximumf>, %136, %cst_120 [1] : vector<8x8xf32> to vector<8xf32>
    %140 = vector.shape_cast %139 : vector<8xf32> to vector<8x1xf32>
    %141 = arith.maximumf %138, %140 : vector<8x1xf32>
    %142 = arith.subf %138, %141 : vector<8x1xf32>
    %143 = math.exp %142 : vector<8x1xf32>
    %144 = vector.broadcast %141 : vector<8x1xf32> to vector<8x8xf32>
    %145 = arith.subf %136, %144 : vector<8x8xf32>
    %146 = math.exp %145 : vector<8x8xf32>
    %c3_121 = arith.constant 3 : index
    %c0_122 = arith.constant 0 : index
    %c0_123 = arith.constant 0 : index
    %147 = vector.load %arg10[%c3_121, %c0_122, %c0_123] : memref<4x8x1xf32, #tpu.memory_space<vmem>>, vector<1x8x1xf32>
    %148 = vector.shape_cast %147 : vector<1x8x1xf32> to vector<8x1xf32>
    %149 = arith.mulf %143, %148 : vector<8x1xf32>
    %cst_124 = arith.constant dense<0.000000e+00> : vector<8xf32>
    %150 = vector.multi_reduction <add>, %146, %cst_124 [1] : vector<8x8xf32> to vector<8xf32>
    %151 = vector.shape_cast %150 : vector<8xf32> to vector<8x1xf32>
    %152 = arith.addf %149, %151 : vector<8x1xf32>
    %c3_125 = arith.constant 3 : index
    %c0_126 = arith.constant 0 : index
    %c0_127 = arith.constant 0 : index
    %153 = vector.load %arg10[%c3_125, %c0_126, %c0_127] : memref<4x8x1xf32, #tpu.memory_space<vmem>>, vector<1x8x1xf32>
    %154 = vector.shape_cast %153 : vector<1x8x1xf32> to vector<8x1xf32>
    %155 = vector.shape_cast %152 : vector<8x1xf32> to vector<1x8x1xf32>
    tpu.vector_store %arg10[%c3_125, %c0_126, %c0_127], %155 {strides = array<i32>} : memref<4x8x1xf32, #tpu.memory_space<vmem>>, vector<1x8x1xf32>,
    %c3_128 = arith.constant 3 : index
    %c0_129 = arith.constant 0 : index
    %c0_130 = arith.constant 0 : index
    %156 = vector.load %arg11[%c3_128, %c0_129, %c0_130] : memref<4x8x32xf32, #tpu.memory_space<vmem>>, vector<1x8x32xf32>
    %157 = vector.shape_cast %156 : vector<1x8x32xf32> to vector<8x32xf32>
    %158 = vector.broadcast %143 : vector<8x1xf32> to vector<8x32xf32>
    %159 = arith.mulf %158, %157 : vector<8x32xf32>
    %cst_131 = arith.constant dense<0.000000e+00> : vector<8x32xf32>
    %160 = tpu.matmul %146, %132, %cst_131 {dimension_numbers = #tpu.dot_dimension_numbers<[1], [0], [0], [1], [0, 0, 1, 1], [], []>} : vector<8x8xf32>, vector<8x32xf32>, vector<8x32xf32> -> vector<8x32xf32>
    %161 = arith.addf %159, %160 : vector<8x32xf32>
    %c3_132 = arith.constant 3 : index
    %c0_133 = arith.constant 0 : index
    %c0_134 = arith.constant 0 : index
    %162 = vector.load %arg11[%c3_132, %c0_133, %c0_134] : memref<4x8x32xf32, #tpu.memory_space<vmem>>, vector<1x8x32xf32>
    %163 = vector.shape_cast %162 : vector<1x8x32xf32> to vector<8x32xf32>
    %164 = vector.shape_cast %161 : vector<8x32xf32> to vector<1x8x32xf32>
    tpu.vector_store %arg11[%c3_132, %c0_133, %c0_134], %164 {strides = array<i32>} : memref<4x8x32xf32, #tpu.memory_space<vmem>>, vector<1x8x32xf32>,
    %c3_135 = arith.constant 3 : index
    %c0_136 = arith.constant 0 : index
    %c0_137 = arith.constant 0 : index
    %165 = vector.load %arg9[%c3_135, %c0_136, %c0_137] : memref<4x8x1xf32, #tpu.memory_space<vmem>>, vector<1x8x1xf32>
    %166 = vector.shape_cast %165 : vector<1x8x1xf32> to vector<8x1xf32>
    %167 = vector.shape_cast %141 : vector<8x1xf32> to vector<1x8x1xf32>
    tpu.vector_store %arg9[%c3_135, %c0_136, %c0_137], %167 {strides = array<i32>} : memref<4x8x1xf32, #tpu.memory_space<vmem>>, vector<1x8x1xf32>,
    %c0_i32_138 = arith.constant 0 : i32
    %168 = arith.cmpi eq, %arg3, %c0_i32_138 : i32
    %169 = arith.extui %168 : i1 to i32
    %c0_i32_139 = arith.constant 0 : i32
    %170 = arith.cmpi ne, %169, %c0_i32_139 : i32
    scf.if %170 {
      %c0_140 = arith.constant 0 : index
      %c0_141 = arith.constant 0 : index
      %c0_142 = arith.constant 0 : index
      %171 = vector.load %arg10[%c0_140, %c0_141, %c0_142] : memref<4x8x1xf32, #tpu.memory_space<vmem>>, vector<1x8x1xf32>
      %172 = vector.shape_cast %171 : vector<1x8x1xf32> to vector<8x1xf32>
      %173 = tpu.reciprocal %172 {approx = true} : vector<8x1xf32> -> vector<8x1xf32>
      %174 = arith.mulf %172, %173 : vector<8x1xf32>
      %cst_143 = arith.constant 2.000000e+00 : f32
      %175 = vector.broadcast %cst_143 : f32 to vector<8x1xf32>
      %176 = arith.subf %175, %174 : vector<8x1xf32>
      %177 = arith.mulf %173, %176 : vector<8x1xf32>
      %c0_144 = arith.constant 0 : index
      %c0_145 = arith.constant 0 : index
      %c0_146 = arith.constant 0 : index
      %178 = vector.load %arg11[%c0_144, %c0_145, %c0_146] : memref<4x8x32xf32, #tpu.memory_space<vmem>>, vector<1x8x32xf32>
      %179 = vector.shape_cast %178 : vector<1x8x32xf32> to vector<8x32xf32>
      %180 = vector.broadcast %177 : vector<8x1xf32> to vector<8x32xf32>
      %181 = arith.mulf %179, %180 : vector<8x32xf32>
      %c0_147 = arith.constant 0 : index
      %c0_148 = arith.constant 0 : index
      %c0_149 = arith.constant 0 : index
      %c0_150 = arith.constant 0 : index
      %182 = vector.load %arg8[%c0_147, %c0_148, %c0_149, %c0_150] : memref<1x8x4x32xf32, #tpu.memory_space<vmem>>, vector<1x8x1x32xf32>
      %183 = vector.shape_cast %182 : vector<1x8x1x32xf32> to vector<8x32xf32>
      %184 = vector.shape_cast %181 : vector<8x32xf32> to vector<1x8x1x32xf32>
      tpu.vector_store %arg8[%c0_147, %c0_148, %c0_149, %c0_150], %184 {strides = array<i32>} : memref<1x8x4x32xf32, #tpu.memory_space<vmem>>, vector<1x8x1x32xf32>,
      %c1_151 = arith.constant 1 : index
      %c0_152 = arith.constant 0 : index
      %c0_153 = arith.constant 0 : index
      %185 = vector.load %arg10[%c1_151, %c0_152, %c0_153] : memref<4x8x1xf32, #tpu.memory_space<vmem>>, vector<1x8x1xf32>
      %186 = vector.shape_cast %185 : vector<1x8x1xf32> to vector<8x1xf32>
      %187 = tpu.reciprocal %186 {approx = true} : vector<8x1xf32> -> vector<8x1xf32>
      %188 = arith.mulf %186, %187 : vector<8x1xf32>
      %cst_154 = arith.constant 2.000000e+00 : f32
      %189 = vector.broadcast %cst_154 : f32 to vector<8x1xf32>
      %190 = arith.subf %189, %188 : vector<8x1xf32>
      %191 = arith.mulf %187, %190 : vector<8x1xf32>
      %c1_155 = arith.constant 1 : index
      %c0_156 = arith.constant 0 : index
      %c0_157 = arith.constant 0 : index
      %192 = vector.load %arg11[%c1_155, %c0_156, %c0_157] : memref<4x8x32xf32, #tpu.memory_space<vmem>>, vector<1x8x32xf32>
      %193 = vector.shape_cast %192 : vector<1x8x32xf32> to vector<8x32xf32>
      %194 = vector.broadcast %191 : vector<8x1xf32> to vector<8x32xf32>
      %195 = arith.mulf %193, %194 : vector<8x32xf32>
      %c0_158 = arith.constant 0 : index
      %c0_159 = arith.constant 0 : index
      %c1_160 = arith.constant 1 : index
      %c0_161 = arith.constant 0 : index
      %196 = vector.load %arg8[%c0_158, %c0_159, %c1_160, %c0_161] : memref<1x8x4x32xf32, #tpu.memory_space<vmem>>, vector<1x8x1x32xf32>
      %197 = vector.shape_cast %196 : vector<1x8x1x32xf32> to vector<8x32xf32>
      %198 = vector.shape_cast %195 : vector<8x32xf32> to vector<1x8x1x32xf32>
      tpu.vector_store %arg8[%c0_158, %c0_159, %c1_160, %c0_161], %198 {strides = array<i32>} : memref<1x8x4x32xf32, #tpu.memory_space<vmem>>, vector<1x8x1x32xf32>,
      %c2_162 = arith.constant 2 : index
      %c0_163 = arith.constant 0 : index
      %c0_164 = arith.constant 0 : index
      %199 = vector.load %arg10[%c2_162, %c0_163, %c0_164] : memref<4x8x1xf32, #tpu.memory_space<vmem>>, vector<1x8x1xf32>
      %200 = vector.shape_cast %199 : vector<1x8x1xf32> to vector<8x1xf32>
      %201 = tpu.reciprocal %200 {approx = true} : vector<8x1xf32> -> vector<8x1xf32>
      %202 = arith.mulf %200, %201 : vector<8x1xf32>
      %cst_165 = arith.constant 2.000000e+00 : f32
      %203 = vector.broadcast %cst_165 : f32 to vector<8x1xf32>
      %204 = arith.subf %203, %202 : vector<8x1xf32>
      %205 = arith.mulf %201, %204 : vector<8x1xf32>
      %c2_166 = arith.constant 2 : index
      %c0_167 = arith.constant 0 : index
      %c0_168 = arith.constant 0 : index
      %206 = vector.load %arg11[%c2_166, %c0_167, %c0_168] : memref<4x8x32xf32, #tpu.memory_space<vmem>>, vector<1x8x32xf32>
      %207 = vector.shape_cast %206 : vector<1x8x32xf32> to vector<8x32xf32>
      %208 = vector.broadcast %205 : vector<8x1xf32> to vector<8x32xf32>
      %209 = arith.mulf %207, %208 : vector<8x32xf32>
      %c0_169 = arith.constant 0 : index
      %c0_170 = arith.constant 0 : index
      %c2_171 = arith.constant 2 : index
      %c0_172 = arith.constant 0 : index
      %210 = vector.load %arg8[%c0_169, %c0_170, %c2_171, %c0_172] : memref<1x8x4x32xf32, #tpu.memory_space<vmem>>, vector<1x8x1x32xf32>
      %211 = vector.shape_cast %210 : vector<1x8x1x32xf32> to vector<8x32xf32>
      %212 = vector.shape_cast %209 : vector<8x32xf32> to vector<1x8x1x32xf32>
      tpu.vector_store %arg8[%c0_169, %c0_170, %c2_171, %c0_172], %212 {strides = array<i32>} : memref<1x8x4x32xf32, #tpu.memory_space<vmem>>, vector<1x8x1x32xf32>,
      %c3_173 = arith.constant 3 : index
      %c0_174 = arith.constant 0 : index
      %c0_175 = arith.constant 0 : index
      %213 = vector.load %arg10[%c3_173, %c0_174, %c0_175] : memref<4x8x1xf32, #tpu.memory_space<vmem>>, vector<1x8x1xf32>
      %214 = vector.shape_cast %213 : vector<1x8x1xf32> to vector<8x1xf32>
      %215 = tpu.reciprocal %214 {approx = true} : vector<8x1xf32> -> vector<8x1xf32>
      %216 = arith.mulf %214, %215 : vector<8x1xf32>
      %cst_176 = arith.constant 2.000000e+00 : f32
      %217 = vector.broadcast %cst_176 : f32 to vector<8x1xf32>
      %218 = arith.subf %217, %216 : vector<8x1xf32>
      %219 = arith.mulf %215, %218 : vector<8x1xf32>
      %c3_177 = arith.constant 3 : index
      %c0_178 = arith.constant 0 : index
      %c0_179 = arith.constant 0 : index
      %220 = vector.load %arg11[%c3_177, %c0_178, %c0_179] : memref<4x8x32xf32, #tpu.memory_space<vmem>>, vector<1x8x32xf32>
      %221 = vector.shape_cast %220 : vector<1x8x32xf32> to vector<8x32xf32>
      %222 = vector.broadcast %219 : vector<8x1xf32> to vector<8x32xf32>
      %223 = arith.mulf %221, %222 : vector<8x32xf32>
      %c0_180 = arith.constant 0 : index
      %c0_181 = arith.constant 0 : index
      %c3_182 = arith.constant 3 : index
      %c0_183 = arith.constant 0 : index
      %224 = vector.load %arg8[%c0_180, %c0_181, %c3_182, %c0_183] : memref<1x8x4x32xf32, #tpu.memory_space<vmem>>, vector<1x8x1x32xf32>
      %225 = vector.shape_cast %224 : vector<1x8x1x32xf32> to vector<8x32xf32>
      %226 = vector.shape_cast %223 : vector<8x32xf32> to vector<1x8x1x32xf32>
      tpu.vector_store %arg8[%c0_180, %c0_181, %c3_182, %c0_183], %226 {strides = array<i32>} : memref<1x8x4x32xf32, #tpu.memory_space<vmem>>, vector<1x8x1x32xf32>,
    } else {
    }
    return
  }
  func.func @transform_0(%arg0: i32, %arg1: i32, %arg2: i32, %arg3: i32) -> (i32, i32, i32, i32) {
    %c0_i32 = arith.constant 0 : i32
    %c0_i32_0 = arith.constant 0 : i32
    return %arg0, %arg2, %arg1, %c0_i32 : i32, i32, i32, i32
  }
  func.func @transform_1(%arg0: i32, %arg1: i32, %arg2: i32, %arg3: i32) -> (i32, i32, i32, i32) {
    %c0_i32 = arith.constant 0 : i32
    %c0_i32_0 = arith.constant 0 : i32
    return %arg0, %arg3, %arg1, %c0_i32 : i32, i32, i32, i32
  }
  func.func @transform_2(%arg0: i32, %arg1: i32, %arg2: i32, %arg3: i32) -> (i32, i32, i32, i32) {
    %c0_i32 = arith.constant 0 : i32
    %c0_i32_0 = arith.constant 0 : i32
    return %arg0, %arg3, %arg1, %c0_i32 : i32, i32, i32, i32
  }
  func.func @transform_3(%arg0: i32, %arg1: i32, %arg2: i32, %arg3: i32) -> (i32, i32) {
    %c0_i32 = arith.constant 0 : i32
    return %arg2, %arg3 : i32, i32
  }
  func.func @transform_4(%arg0: i32, %arg1: i32, %arg2: i32, %arg3: i32) -> (i32, i32, i32, i32) {
    %c0_i32 = arith.constant 0 : i32
    %c0_i32_0 = arith.constant 0 : i32
    return %arg0, %arg2, %arg1, %c0_i32 : i32, i32, i32, i32
  }
}

</mosaic_0001>

<bundles_post_ra>
// kernel: tpu_custom_call.1
= control target key start
LH: loop header
LB: loop body
LE: loop exit
PB: predicated region body
PF: predicated region fallthrough
CT: control target
= control target key end

     0   :  { %s3164_s0 = inlined_call_operand.hbm [shape: f32[2,8,4,32], index: 0, kind: input, shape index: {}]   ;;  %s3165_s1 = inlined_call_operand.hbm [shape: f32[2,8,4,32], index: 1, kind: input, shape index: {}]   ;;  %s3166_s2 = inlined_call_operand.hbm [shape: f32[2,8,4,32], index: 2, kind: input, shape index: {}]   ;;  %s3167_s3 = inlined_call_operand.hbm [shape: f32[8,8], index: 3, kind: input, shape index: {}]   ;;  %s3168_s4 = inlined_call_operand.hbm [shape: f32[2,8,4,32], index: 4, kind: output, shape index: {}]  }
   0x1   :  { %3177 = sst [smem:[#allocation20_spill]] %s3164_s0 }
   0x2   :  { %3178 = sst [smem:[#allocation21_spill]] %s3165_s1 }
   0x3   :  { %9 = vsyncpa [#allocation6], 0 }
   0x4   :  { %11 = vsyncpa [#allocation6 + $0x1], 0 }
   0x5   :  { %12 = vsyncpa [#allocation9], 0 }
   0x6   :  { %14 = vsyncpa [#allocation9 + $0x1], 0 }
   0x7   :  { %15 = vsyncpa [#allocation12], 0 }
   0x8   :  { %16 = vsyncpa [#allocation7], 0 }
   0x9   :  { %18 = vsyncpa [#allocation7 + $0x1], 0  ;;  %s2471_s15 = smov 0   ;;  %s2473_s16 = smov 0  }
   0xa   :  { %s2475_s17 = smov 0   ;;  %s2477_s18 = smov 0  }
   0xb   :  { %s2479_s19 = smov 0   ;;  %s2481_s20 = smov 0  }
   0xc LB: > { %3179 = sst [smem:[#allocation18_spill]] %s2426_s19  ;;  %s50_s21 = sadd.s32 1, %s2426_s19  ;;  %s2430_s20 = sphi %s2481_s20, %s24_s20   ;;  %s2426_s19 = sphi %s2479_s19, %s3197_s19   ;;  %s2422_s18 = sphi %s2477_s18, %s3196_s18   ;;  %s2418_s17 = sphi %s2475_s17, %s3200_s17   ;;  %s2414_s16 = sphi %s2473_s16, %s3199_s16   ;;  %s2410_s15 = sphi %s2471_s15, %s3198_s15  }
   0xd   : > { %s61_s22 = sadd.s32 1, %s2418_s17  ;;  %p52_p0 = scmp.ge.s32.totalorder %s50_s21, 2 }
   0xe   : > { %p68_p1 = scmp.ne.s32.totalorder %s2418_s17, %s2414_s16  ;;  %p69_p2 = scmp.eq.s32.totalorder %s2430_s20, 0 }
   0xf   : > { %s3202_s21 = smov (%p52_p0, %s50_s21), 0  ;;  %p2145_p5 = scmp.lt.s32.totalorder %s2430_s20, 2 }
  0x10   : > { %3180 = sst [smem:[#allocation19_spill]] %s3202_s21  ;;  %p70_p4 = por %p69_p2, %p68_p1 }
  0x11   : > { %s54_s23 = ssub.s32 %s2426_s19, %s3202_s21  ;;  %s230_s24 = sand.u32 1, %s2418_s17  }
  0x12   : > { %p59_p6 = scmp.eq.s32.totalorder %s54_s23, 0  ;;  %s2518_s25 = sshll.u32 %s230_s24, 5 }
  0x13   : > { %s2521_s26 = sshll.u32 %s2426_s19, 9  ;;  %p2523_p7 = pnand %p2145_p5, %p70_p4 }
  0x14   : > { %s2528_s28 = scalar_select %p59_p6, %s2418_s17, %s61_s22  }
  0x15   : > { %s254_s29 = sand.u32 1, %s2430_s20   ;;  %s3182_s1 = sld [smem:[#allocation21_spill]] }
  0x16   : > { %s258_s7 = scalar_lea.vmem [#allocation8], %s2518_s25  ;;  %s2536_s9 = scalar_lea.sflag [#allocation9], %s254_s29 }
  0x17   : > { %s268_s8 = sshll.u32 %s258_s7, 4  ;;  %p3176_p8 = pneg %p2523_p7  ;;  %s269_s8 = int_to_ptr.vmem [resolvable:$true] %s268_s8 }
  0x18   : > { %s2245_s10 = scalar_lea.vmem %s269_s8, 512  ;;  %s2432_s11 = smov [#allocation8]  }
  0x19   : > { %p2246_p9 = scmp.ne.s32.totalorder %s269_s8, %s2245_s10  ;;  %s2250_s12 = sshll.u32 %s2432_s11, 4  ;;  %s2251_s12 = int_to_ptr.vmem [resolvable:$false] %s2250_s12 }
  0x1a   : > { %s2252_s13 = scalar_lea.vmem %s2251_s12, 1024  ;;  %p2253_p12 = scmp.lt.s32.totalorder %s269_s8, %s2251_s12 }
  0x1b   : > { %s267_s6 = scalar_lea.hbm %s3182_s1, %s2521_s26  ;;  %p2248_p10 = pnand %p2246_p9, %p3176_p8 }
  0x1c   : > { %p2254_p13 = scmp.lt.s32.totalorder %s2252_s13, %s2245_s10 }
  0x1d   : > { %p2249_p11 = pneg %p2248_p10 }
  0x1e   : > { %p2255_p0 = por %p2254_p13, %p2253_p12 }
  0x20   : > { %p2256_p2 = pnand %p2255_p0, %p2249_p11 }
  0x22   : > { %2259 = shalt.err (!%p2256_p2)
}
  0x23   : > { %s3169_s14 = smov 64   ;;  %s3171_s22 = smov 4  }
  0x24   : > { %2136 = dma.hbm_to_vmem [thread:$0]  (!%p2523_p7), %s267_s6, 512, %s269_s8, %s2536_s9, %s3169_s14, %s3169_s14, %s3171_s22  }
  0x25   : > { %s2550_s23 = sadd.s32 4294967295, %s2430_s20   ;;  %s2018_s29 = sadd.s32 4294967294, %s2430_s20  }
  0x26   : > { %p74_p4 = scmp.ne.s32.totalorder %s2414_s16, %s2410_s15  ;;  %p3175_p5 = scmp.eq.s32.totalorder %s2550_s23, 0 }
  0x27   : > { %p190_p6 = scmp.eq.s32.totalorder %s2550_s23, 1  ;;  %p196_p9 = scmp.eq.s32.totalorder %s2018_s29, 1 }
  0x28   : > { %p2019_p10 = scmp.ge.s32.totalorder %s2430_s20, 1  ;;  %p2560_p11 = por %p3175_p5, %p74_p4 }
  0x29   : > { %p2567_p12 = por %p190_p6, %p68_p1  ;;  %p2571_p13 = por %p196_p9, %p74_p4 }
  0x2a   : > { %p203_p0 = scmp.lt.s32.totalorder %s2430_s20, 3  ;;  %s2435_s8 = smov [#allocation11]  }
  0x2b   : > { %s3185_s6 = scalar_select %p2571_p13, 1, 0 }
  0x2c   : > { %p2576_p2 = pnand %p2019_p10, %p203_p0  ;;  %s219_s10 = sshll.u32 %s2435_s8, 4  ;;  %s2580_s10 = int_to_ptr.vmem [resolvable:$true] %s219_s10 }
  0x2d   : > { %s3187_s0 = sld [smem:[#allocation20_spill]]  ;;  %s234_s29 = scalar_lea.vmem [#allocation5], %s2518_s25 }
  0x2e   : > { %p2126_p1 = pneg %p2576_p2  ;;  %s244_s14 = sshll.u32 %s234_s29, 4  ;;  %s245_s14 = int_to_ptr.vmem [resolvable:$true] %s244_s14 }
  0x2f   : > { %s231_s1 = scalar_lea.sflag [#allocation6], %s230_s24  ;;  %s2273_s21 = scalar_lea.vmem %s245_s14, 512 }
  0x30   : > { %p2591_p4 = pnand %p2126_p1, %p3175_p5  ;;  %p2274_p6 = scmp.ne.s32.totalorder %s245_s14, %s2273_s21 }
  0x31   : > { %s2436_s8 = smov [#allocation5]  }
  0x32   : > { %p2276_p9 = pnand %p2274_p6, %p3176_p8  ;;  %s2278_s19 = sshll.u32 %s2436_s8, 4  ;;  %s2279_s19 = int_to_ptr.vmem [resolvable:$false] %s2278_s19 }
  0x33   : > { %s243_s13 = scalar_lea.hbm %s3187_s0, %s2521_s26  ;;  %s2280_s11 = scalar_lea.vmem %s2279_s19, 1024 }
  0x34   : > { %p2277_p10 = pneg %p2276_p9  ;;  %p2281_p0 = scmp.lt.s32.totalorder %s245_s14, %s2279_s19 }
  0x35   : > { %p2282_p3 = scmp.lt.s32.totalorder %s2280_s11, %s2273_s21 }
  0x37   : > { %p2283_p13 = por %p2282_p3, %p2281_p0 }
  0x39   : > { %p2284_p1 = pnand %p2283_p13, %p2277_p10 }
  0x3b   : > { %2287 = shalt.err (!%p2284_p1)
}
  0x3c   : > { %s3189_s12 = smov 4   ;;  %s3190_s29 = smov 64  }
  0x3d   : > { %2133 = dma.hbm_to_vmem [thread:$0]  (!%p2523_p7), %s243_s13, 512, %s245_s14, %s231_s1, %s3190_s29, %s3190_s29, %s3189_s12  }
  0x3e   : > { %p2290_p6 = pneg %p2591_p4  ;;  %s2299_s24 = scalar_lea.vmem %s2580_s10, 128 }
  0x3f   : > { %p2300_p9 = scmp.ne.s32.totalorder %s2580_s10, %s2299_s24  ;;  %p2307_p3 = scmp.lt.s32.totalorder %s2580_s10, %s2580_s10 }
  0x40   : > { %p2308_p13 = scmp.lt.s32.totalorder %s2299_s24, %s2299_s24 }
  0x41   : > { %p2302_p5 = pnand %p2300_p9, %p2290_p6 }
  0x42   : > { %p2309_p10 = por %p2308_p13, %p2307_p3 }
  0x43   : > { %p2303_p8 = pneg %p2302_p5 }
  0x45   : > { %p2310_p0 = pnand %p2309_p10, %p2303_p8 }
  0x47   : > { %2313 = shalt.err (!%p2310_p0)
}
  0x48   : > { %2129 = dma.hbm_to_vmem [thread:$0]  (!%p2591_p4), %s3167_s3, 128, %s2580_s10, [#allocation12]  }
  0x49   : > { %s291_s13 = scalar_lea.hbm %s3166_s2, %s2521_s26  ;;  %s282_s8 = scalar_lea.vmem [#allocation10], %s2518_s25 }
  0x4a   : > { %s292_s11 = sshll.u32 %s282_s8, 4  ;;  %p3191_p5 = pneg %p2523_p7  ;;  %s293_s11 = int_to_ptr.vmem [resolvable:$true] %s292_s11 }
  0x4b   : > { %s2327_s24 = scalar_lea.vmem %s293_s11, 512  ;;  %s2437_s22 = smov [#allocation10]  }
  0x4c   : > { %p2328_p8 = scmp.ne.s32.totalorder %s293_s11, %s2327_s24  ;;  %s2332_s0 = sshll.u32 %s2437_s22, 4  ;;  %s2333_s0 = int_to_ptr.vmem [resolvable:$false] %s2332_s0 }
  0x4d   : > { %s2334_s19 = scalar_lea.vmem %s2333_s0, 1024  ;;  %p2335_p9 = scmp.lt.s32.totalorder %s293_s11, %s2333_s0 }
  0x4e   : > { %p2330_p1 = pnand %p2328_p8, %p3191_p5  ;;  %p2336_p3 = scmp.lt.s32.totalorder %s2334_s19, %s2327_s24 }
  0x50   : > { %p2331_p6 = pneg %p2330_p1  ;;  %p2337_p4 = por %p2336_p3, %p2335_p9 }
  0x52   : > { %p2338_p13 = pnand %p2337_p4, %p2331_p6 }
  0x54   : > { %2341 = shalt.err (!%p2338_p13)
}
  0x55   : > { %2139 = dma.hbm_to_vmem [thread:$0]  (!%p2523_p7), %s291_s13, 512, %s293_s11, %s2536_s9, %s3190_s29, %s3190_s29, %s3189_s12  }
  0x56   : > { %304 = sbr.rel (%p2576_p2) target bundleno = 1407 (0x57f), region = 36  ;;  %s2634_s25 = sand.u32 (!%p2576_p2), 1, %s2414_s16  }
  0x57   : > { %s2637_s0 = sshll.u32 (!%p2576_p2), %s2634_s25, 5  ;;  %s307_s26 = scalar_lea.sflag (!%p2576_p2), [#allocation6], %s2634_s25 }
  0x58   : > { %s2641_s10 = scalar_lea.vmem (!%p2576_p2), [#allocation5], %s2637_s0 }
  0x5b   : > { %2393 = dma.done.wait (%p2560_p11), %s307_s26, 512  }
  0x5c   : > { %2395 = vsyncadd (%p2560_p11), %s307_s26, 4294966784  ;;  %s315_s27 = sand.u32 1, %s2550_s23   ;;  %s2649_s7 = scalar_lea.vmem [#allocation8], %s2637_s0 }
  0x5d   : > { %s316_s9 = scalar_lea.sflag [#allocation9], %s315_s27 }
  0x5e   : > { %2397 = dma.done.wait (%p2560_p11), %s316_s9, 1024  }
  0x5f   : > { %2399 = vsyncadd (%p2560_p11), %s316_s9, 4294966272  ;;  %s2656_s12 = scalar_lea.vmem [#allocation10], %s2637_s0  ;;  %p3192_p7 = scmp.eq.s32.totalorder %s2550_s23, 0 }
  0x61   : > { %2401 = dma.done.wait (%p3192_p7), [#allocation12], 128   ;;  %p3193_p2 = pmov %p3192_p7 }
  0x62   : > { %vm384_vm0 = vcmask 261120   ;;  %v2438_v0 = vmov 0.0   ;;  %vm2439_vm1 = vmmov 0   ;;  %vm431_vm2 = vcmask 1041409   ;;  %v398_v1 = vld [vmem:[%s2649_s7] sm:$0x1] }
  0x63   : > { %2403 = vsyncadd (%p3193_p2), [#allocation12], 4294967168  ;;  %2074 = vmatprep.subr.mxu0 %v2438_v0  ;;  %385 = vst.msk [vmem:[#allocation4] sm:$0xff] %vm384_vm0, %v2438_v0  ;;  %2079 = vmatprep.subr.mxu1 %v2438_v0  ;;  %vm434_vm3 = vcmask 1042434   ;;  %vm437_vm4 = vcmask 1043459   ;;  %vm440_vm5 = vcmask 1044484  }
  0x64   : > { %386 = vst.msk [vmem:[#allocation4 + $0x8] sm:$0xff] %vm384_vm0, %v2438_v0  ;;  %387 = vst.msk [vmem:[#allocation4 + $0x10] sm:$0xff] %vm384_vm0, %v2438_v0  ;;  %2076 = vmatprep.mubr.msk.f32.mxu0 %vm2439_vm1, %v2438_v0  ;;  %2081 = vmatprep.mubr.msk.f32.mxu1 %vm2439_vm1, %v2438_v0  ;;  %vm443_vm6 = vcmask 1045509   ;;  %vm446_vm7 = vcmask 1046534   ;;  %v399_v2 = vld [vmem:[%s2649_s7 + $0x4] sm:$0x1] }
  0x65   : > { %388 = vst.msk [vmem:[#allocation4 + $0x18] sm:$0xff] %vm384_vm0, %v2438_v0  ;;  %v400_v3 = vld [vmem:[%s2649_s7 + $0x8] sm:$0x1]  ;;  %v401_v4 = vld [vmem:[%s2649_s7 + $0xc] sm:$0x1]  ;;  %v459_v9 = vrot.slane %v399_v2, 7 }
  0x66   : > { %v402_v5 = vld [vmem:[%s2649_s7 + $0x10] sm:$0x1]  ;;  %v403_v6 = vld [vmem:[%s2649_s7 + $0x14] sm:$0x1]  ;;  %v404_v7 = vld [vmem:[%s2649_s7 + $0x18] sm:$0x1] }
  0x67   : > { %v405_v8 = vld [vmem:[%s2649_s7 + $0x1c] sm:$0x1]  ;;  %v461_v10 = vrot.slane %v400_v3, 6  ;;  %vm449_vm8 = vcmask 1047559   ;;  %v463_v11 = vrot.slane %v401_v4, 5  ;;  %v465_v12 = vrot.slane %v402_v5, 4 }
  0x68   : > { %v467_v13 = vrot.slane %v403_v6, 3  ;;  %v390_v14 = vld [vmem:[%s2641_s10] sm:$0x1]  ;;  %v460_v15 = vsel %vm431_vm2, %v459_v9, %v398_v1  ;;  %v469_v16 = vrot.slane %v404_v7, 2  ;;  %v471_v17 = vrot.slane %v405_v8, 1  ;;  %s3023_s23 = scalar_lea.vmem [#allocation13], %s2637_s0 }
  0x69   : > { %v391_v18 = vld [vmem:[%s2641_s10 + $0x4] sm:$0x1]  ;;  %v392_v19 = vld [vmem:[%s2641_s10 + $0x8] sm:$0x1]  ;;  %v462_v20 = vsel %vm434_vm3, %v461_v10, %v460_v15  ;;  %v393_v21 = vld [vmem:[%s2641_s10 + $0xc] sm:$0x1] }
  0x6a   : > { %v394_v22 = vld [vmem:[%s2641_s10 + $0x10] sm:$0x1]  ;;  %v395_v23 = vld [vmem:[%s2641_s10 + $0x14] sm:$0x1]  ;;  %v464_v24 = vsel %vm437_vm4, %v463_v11, %v462_v20  ;;  %v396_v25 = vld [vmem:[%s2641_s10 + $0x18] sm:$0x1] }
  0x6b   : > { %v397_v26 = vld [vmem:[%s2641_s10 + $0x1c] sm:$0x1]  ;;  %v414_v27 = vmul.f32 0.17677669, %v390_v14  ;;  %v466_v28 = vsel %vm440_vm5, %v465_v12, %v464_v24  ;;  %v415_v29 = vmul.f32 0.17677669, %v391_v18 }
  0x6c   : > { %v416_v30 = vmul.f32 0.17677669, %v392_v19  ;;  %v417_v31 = vmul.f32 0.17677669, %v393_v21  ;;  %v468_v32 = vsel %vm443_vm6, %v467_v13, %v466_v28  ;;  %v418_v33 = vmul.f32 0.17677669, %v394_v22 }
  0x6d   : > { %v419_v34 = vmul.f32 0.17677669, %v395_v23  ;;  %v420_v35 = vmul.f32 0.17677669, %v396_v25  ;;  %v470_v36 = vsel %vm446_vm7, %v469_v16, %v468_v32  ;;  %v421_v37 = vmul.f32 0.17677669, %v397_v26 }
  0x6e   : > { %v430_v38 = vrot.slane %v415_v29, 7  ;;  %v433_v39 = vrot.slane %v416_v30, 6  ;;  %v472_v40 = vsel %vm449_vm8, %v471_v17, %v470_v36  ;;  %v436_v41 = vrot.slane %v417_v31, 5  ;;  %v2723_v54 = vld [vmem:[#allocation11] sm:$0xff]  ;;  %v408_v2 = vld [vmem:[%s2656_s12 + $0x8] sm:$0x1] }
  0x6f   : > { %v439_v42 = vrot.slane %v418_v33, 4  ;;  %2075 = vmatpush3.xpose.msk.msra.mxu0 %vm384_vm0, %v472_v40  ;;  %v442_v44 = vrot.slane %v419_v34, 3  ;;  %v445_v46 = vrot.slane %v420_v35, 2  ;;  %v448_v48 = vrot.slane %v421_v37, 1  ;;  %v407_v1 = vld [vmem:[%s2656_s12 + $0x4] sm:$0x1] }
  0x70   : > { %v432_v43 = vsel %vm431_vm2, %v430_v38, %v414_v27  ;;  %2089 = vmatprep.subr.mxu0 %v2438_v0  ;;  %vm375_vm9 = vcmask 7168   ;;  %v2440_v53 = vmov -inf   ;;  %vm549_vm10 = vcmask 64512   ;;  %v409_v3 = vld [vmem:[%s2656_s12 + $0xc] sm:$0x1]  ;;  %s2057_s30 = sshll.u32 %s2422_s18, 9 }
  0x71   : > { %v435_v45 = vsel %vm434_vm3, %v433_v39, %v432_v43  ;;  %376 = vst.msk [vmem:[#allocation2] sm:$0xff] %vm375_vm9, %v2440_v53  ;;  %377 = vst.msk [vmem:[#allocation2 + $0x8] sm:$0xff] %vm375_vm9, %v2440_v53  ;;  %v2441_v59 = vmov 0   ;;  %v410_v4 = vld [vmem:[%s2656_s12 + $0x10] sm:$0x1]  ;;  %v588_v8 = vrot.slane %v407_v1, 7  ;;  %s3106_s1 = scalar_lea.hbm %s3168_s4, %s2057_s30 }
  0x72   : > { %v438_v47 = vsel %vm437_vm4, %v436_v41, %v435_v45  ;;  %378 = vst.msk [vmem:[#allocation2 + $0x10] sm:$0xff] %vm375_vm9, %v2440_v53  ;;  %379 = vst.msk [vmem:[#allocation2 + $0x18] sm:$0xff] %vm375_vm9, %v2440_v53  ;;  %2206 = vset.pattern.permute.xlu0 %v2441_v59  ;;  %2207 = vset.pattern.permute.xlu1 %v2441_v59  ;;  %v406_v5 = vld [vmem:[%s2656_s12] sm:$0x1]  ;;  %v411_v6 = vld [vmem:[%s2656_s12 + $0x14] sm:$0x1] }
  0x73   : > { %v441_v49 = vsel %vm440_vm5, %v439_v42, %v438_v47  ;;  %380 = vst.msk [vmem:[#allocation3] sm:$0xff] %vm375_vm9, %v2438_v0  ;;  %381 = vst.msk [vmem:[#allocation3 + $0x8] sm:$0xff] %vm375_vm9, %v2438_v0  ;;  %v412_v7 = vld [vmem:[%s2656_s12 + $0x18] sm:$0x1]  ;;  %v590_v9 = vrot.slane %v408_v2, 6  ;;  %v592_v10 = vrot.slane %v409_v3, 5  ;;  %v589_v13 = vsel %vm431_vm2, %v588_v8, %v406_v5 }
  0x74   : > { %v444_v50 = vsel %vm443_vm6, %v442_v44, %v441_v49  ;;  %382 = vst.msk [vmem:[#allocation3 + $0x10] sm:$0xff] %vm375_vm9, %v2438_v0  ;;  %383 = vst.msk [vmem:[#allocation3 + $0x18] sm:$0xff] %vm375_vm9, %v2438_v0  ;;  %v413_v11 = vld [vmem:[%s2656_s12 + $0x1c] sm:$0x1]  ;;  %v594_v12 = vrot.slane %v410_v4, 4  ;;  %v596_v14 = vrot.slane %v411_v6, 3 }
  0x75   : > { %v447_v51 = vsel %vm446_vm7, %v445_v46, %v444_v50  ;;  %v591_v15 = vsel %vm434_vm3, %v590_v9, %v589_v13  ;;  %v598_v16 = vrot.slane %v412_v7, 2  ;;  %v600_v18 = vrot.slane %v413_v11, 1  ;;  %v688_v23 = vld [vmem:[%s2649_s7 + $0x5] sm:$0x1]  ;;  %v689_v24 = vld [vmem:[%s2649_s7 + $0x9] sm:$0x1] }
  0x76   : > { %v450_v52 = vsel %vm449_vm8, %v448_v48, %v447_v51  ;;  %v593_v17 = vsel %vm437_vm4, %v592_v10, %v591_v15  ;;  %v690_v25 = vld [vmem:[%s2649_s7 + $0xd] sm:$0x1]  ;;  %v741_v26 = vrot.slane %v688_v23, 7  ;;  %v2760_v27 = vld [vmem:[%s2649_s7 + $0x11] sm:$0x1]  ;;  %v743_v31 = vrot.slane %v689_v24, 6 }
  0x77   : > { %2077 = vmatmul.mubr.msk.f32.vlgmr.msra.gmra.mxu0 %vm384_vm0, %v450_v52  ;;  %v595_v19 = vsel %vm440_vm5, %v594_v12, %v593_v17  ;;  %v2763_v28 = vld [vmem:[%s2649_s7 + $0x15] sm:$0x1]  ;;  %v680_v29 = vld [vmem:[%s2641_s10 + $0x5] sm:$0x1]  ;;  %v687_v30 = vld [vmem:[%s2649_s7 + $0x1] sm:$0x1] }
  0x78   : > { %2091 = vmatprep.mubr.msk.f32.mxu0 %vm2439_vm1, %v2438_v0  ;;  %v2730_v60 = vld [vmem:[#allocation2] sm:$0xff]  ;;  %v597_v20 = vsel %vm443_vm6, %v596_v14, %v595_v19  ;;  %v745_v32 = vrot.slane %v690_v25, 5  ;;  %v681_v33 = vld [vmem:[%s2641_s10 + $0x9] sm:$0x1]  ;;  %v2769_v34 = vld [vmem:[%s2649_s7 + $0x19] sm:$0x1]  ;;  %v742_v48 = vsel %vm431_vm2, %v741_v26, %v687_v30 }
  0x79   : > { %v599_v21 = vsel %vm446_vm7, %v598_v16, %v597_v20  ;;  %v2772_v35 = vld [vmem:[%s2649_s7 + $0x1d] sm:$0x1]  ;;  %v679_v36 = vld [vmem:[%s2641_s10 + $0x1] sm:$0x1]  ;;  %v747_v37 = vrot.slane %v2760_v27, 4  ;;  %v749_v38 = vrot.slane %v2763_v28, 3  ;;  %v744_v1 = vsel %vm434_vm3, %v743_v31, %v742_v48 }
  0x7a   : > { %v601_v22 = vsel %vm449_vm8, %v600_v18, %v599_v21  ;;  %v682_v39 = vld [vmem:[%s2641_s10 + $0xd] sm:$0x1]  ;;  %v683_v40 = vld [vmem:[%s2641_s10 + $0x11] sm:$0x1]  ;;  %v684_v41 = vld [vmem:[%s2641_s10 + $0x15] sm:$0x1]  ;;  %v746_v14 = vsel %vm437_vm4, %v745_v32, %v744_v1 }
  0x7b   : > { %2080 = vmatpush3.msra.mxu1 %v601_v22  ;;  %v704_v42 = vmul.f32 0.17677669, %v680_v29  ;;  %v705_v43 = vmul.f32 0.17677669, %v681_v33  ;;  %v751_v44 = vrot.slane %v2769_v34, 2  ;;  %v753_v45 = vrot.slane %v2772_v35, 1 }
  0x7c   : > { %2084 = vmatprep.subr.mxu1 %v2438_v0  ;;  %v685_v46 = vld [vmem:[%s2641_s10 + $0x19] sm:$0x1]  ;;  %v686_v47 = vld [vmem:[%s2641_s10 + $0x1d] sm:$0x1]  ;;  %v703_v49 = vmul.f32 0.17677669, %v679_v36  ;;  %v748_v36 = vsel %vm440_vm5, %v747_v37, %v746_v14 }
  0x7d   : > { %v2785_v50 = vmul.f32 0.17677669, %v682_v39  ;;  %v962_v51 = vld [vmem:[%s2641_s10 + $0x6] sm:$0x1]  ;;  %v2788_v52 = vmul.f32 0.17677669, %v683_v40 }
  0x7e   : > { %v2790_v53 = vmul.f32 0.17677669, %v684_v41  ;;  %v719_v59 = vrot.slane %v704_v42, 7  ;;  %v969_v2 = vld [vmem:[%s2649_s7 + $0x2] sm:$0x1]  ;;  %vm1598_vm11 = vcmask 253952  }
  0x7f   : > { %v971_v3 = vld [vmem:[%s2649_s7 + $0xa] sm:$0x1]  ;;  %v986_v4 = vmul.f32 0.17677669, %v962_v51  ;;  %v723_v5 = vrot.slane %v2785_v50, 5  ;;  %v725_v9 = vrot.slane %v2788_v52, 4  ;;  %v750_v52 = vsel %vm443_vm6, %v749_v38, %v748_v36 }
  0x80   : > { %v961_v7 = vld [vmem:[%s2641_s10 + $0x2] sm:$0x1]  ;;  %v963_v8 = vld [vmem:[%s2641_s10 + $0xa] sm:$0x1]  ;;  %v727_v10 = vrot.slane %v2790_v53, 3  ;;  %v720_v15 = vsel %vm431_vm2, %v719_v59, %v703_v49  ;;  %v1025_v17 = vrot.slane %v971_v3, 6 }
  0x81   : > { %v972_v11 = vld [vmem:[%s2649_s7 + $0xe] sm:$0x1]  ;;  %v1244_v12 = vld [vmem:[%s2641_s10 + $0x7] sm:$0x1]  ;;  %v985_v21 = vmul.f32 0.17677669, %v961_v7 }
  0x82   : > { %v964_v18 = vld [vmem:[%s2641_s10 + $0xe] sm:$0x1]  ;;  %v1252_v19 = vld [vmem:[%s2649_s7 + $0x7] sm:$0x1]  ;;  %v987_v22 = vmul.f32 0.17677669, %v963_v8 }
  0x83   : > { %v1001_v23 = vrot.slane %v986_v4, 7  ;;  %v1253_v25 = vld [vmem:[%s2649_s7 + $0xb] sm:$0x1]  ;;  %v1268_v27 = vmul.f32 0.17677669, %v1244_v12  ;;  %v1027_v31 = vrot.slane %v972_v11, 5 }
  0x84   : > { %v1245_v26 = vld [vmem:[%s2641_s10 + $0xb] sm:$0x1]  ;;  %v973_v30 = vld [vmem:[%s2649_s7 + $0x12] sm:$0x1]  ;;  %v1305_v32 = vrot.slane %v1252_v19, 7  ;;  %v1307_v50 = vrot.slane %v1253_v25, 6 }
  0x85   : > { %v1243_v33 = vld [vmem:[%s2641_s10 + $0x3] sm:$0x1]  ;;  %v965_v39 = vld [vmem:[%s2641_s10 + $0x12] sm:$0x1]  ;;  %v988_v40 = vmul.f32 0.17677669, %v964_v18  ;;  %v1002_v48 = vsel %vm431_vm2, %v1001_v23, %v985_v21 }
  0x86   : > { %v1251_v41 = vld [vmem:[%s2649_s7 + $0x3] sm:$0x1]  ;;  %v1254_v49 = vld [vmem:[%s2649_s7 + $0xf] sm:$0x1]  ;;  %v1267_v37 = vmul.f32 0.17677669, %v1243_v33 }
  0x87   : > { %v1283_v51 = vrot.slane %v1268_v27, 7  ;;  %v966_v59 = vld [vmem:[%s2641_s10 + $0x16] sm:$0x1]  ;;  %v1306_v1 = vsel %vm431_vm2, %v1305_v32, %v1251_v41  ;;  %v1029_v3 = vrot.slane %v973_v30, 4  ;;  %v1005_v4 = vrot.slane %v988_v40, 5  ;;  %s1858_s29 = sshll.u32 %s3023_s23, 4  ;;  %s3108_s29 = int_to_ptr.vmem [resolvable:$true] %s1858_s29 }
  0x88   : > { %v1255_v11 = vld [vmem:[%s2649_s7 + $0x13] sm:$0x1]  ;;  %v1309_v38 = vrot.slane %v1254_v49, 5  ;;  %v975_v14 = vld [vmem:[%s2649_s7 + $0x1a] sm:$0x1]  ;;  %s1842_s14 = scalar_lea.sflag [#allocation7], %s2634_s25 }
  0x89   : > { %v1284_v18 = vsel %vm431_vm2, %v1283_v51, %v1267_v37  ;;  %v1311_v25 = vrot.slane %v1255_v11, 4  ;;  %v968_v30 = vld [vmem:[%s2641_s10 + $0x1e] sm:$0x1]  ;;  %v1033_v36 = vrot.slane %v975_v14, 2  ;;  %v1257_v41 = vld [vmem:[%s2649_s7 + $0x1b] sm:$0x1] }
  0x8a   : > { %v1250_v37 = vld [vmem:[%s2641_s10 + $0x1f] sm:$0x1]  ;;  %s2342_s13 = scalar_lea.vmem %s3108_s29, 512  ;;  %s2443_s8 = smov [#allocation13]  }
  0x8b   : > { %p2343_p11 = scmp.ne.s32.totalorder %s3108_s29, %s2342_s13  ;;  %s2346_s11 = sshll.u32 %s2443_s8, 4  ;;  %s2347_s11 = int_to_ptr.vmem [resolvable:$false] %s2346_s11 }
  0x8c   : > { %s2348_s24 = scalar_lea.vmem %s2347_s11, 1024  ;;  %p2349_p8 = scmp.lt.s32.totalorder %s3108_s29, %s2347_s11 }
  0x8d   : > { %p2344_p10 = pnand %p2343_p11, %p2567_p12  ;;  %p2350_p5 = scmp.lt.s32.totalorder %s2348_s24, %s2342_s13 }
  0x8f   : > { %p2345_p0 = pneg %p2344_p10  ;;  %p2351_p1 = por %p2350_p5, %p2349_p8 }
  0x91   : > { %p2352_p6 = pnand %p2351_p1, %p2345_p0 }
 0x137   : > { %v544_v55 = vpop.f32.mrf.mxu0 }
 0x138   : > { %v2726_v56 = vadd.f32 %v544_v55, %v2723_v54  ;;  %v970_v55 = vld [vmem:[%s2649_s7 + $0x6] sm:$0x1] }
 0x139   : > { %v2078_v57 = vpop.f32.mrf.mxu0  ;;  %v1023_v6 = vrot.slane %v970_v55, 7  ;;  %v974_v55 = vld [vmem:[%s2649_s7 + $0x16] sm:$0x1] }
 0x13a   : > { %v550_v58 = vsel %vm549_vm10, %v2726_v56, -inf  ;;  %v2793_v57 = vmul.f32 0.17677669, %v685_v46  ;;  %v1246_v46 = vld [vmem:[%s2641_s10 + $0xf] sm:$0x1] }
 0x13b   : > { %551 = vmax.xlane.f32.xlu0 %v550_v58  ;;  %v2795_v58 = vmul.f32 0.17677669, %v686_v47  ;;  %v1024_v24 = vsel %vm431_vm2, %v1023_v6, %v969_v2  ;;  %v1269_v47 = vmul.f32 0.17677669, %v1245_v26  ;;  %v1247_v6 = vld [vmem:[%s2641_s10 + $0x13] sm:$0x1] }
 0x13c   : > { %v729_v16 = vrot.slane %v2793_v57, 2  ;;  %v1026_v42 = vsel %vm434_vm3, %v1025_v17, %v1024_v24  ;;  %v1270_v7 = vmul.f32 0.17677669, %v1246_v46  ;;  %v1308_v17 = vsel %vm434_vm3, %v1307_v50, %v1306_v1  ;;  %v1256_v24 = vld [vmem:[%s2649_s7 + $0x17] sm:$0x1] }
 0x13d   : > { %v1028_v8 = vsel %vm437_vm4, %v1027_v31, %v1026_v42  ;;  %v1285_v12 = vrot.slane %v1269_v47, 6  ;;  %v1271_v23 = vmul.f32 0.17677669, %v1247_v6  ;;  %v1310_v31 = vsel %vm437_vm4, %v1309_v38, %v1308_v17 }
 0x13e   : > { %v1030_v34 = vsel %vm440_vm5, %v1029_v3, %v1028_v8  ;;  %v1287_v26 = vrot.slane %v1270_v7, 5  ;;  %v1313_v42 = vrot.slane %v1256_v24, 3  ;;  %v731_v46 = vrot.slane %v2795_v58, 1  ;;  %v1258_v58 = vld [vmem:[%s2649_s7 + $0x1f] sm:$0x1] }
 0x13f   : > { %v1286_v32 = vsel %vm434_vm3, %v1285_v12, %v1284_v18  ;;  %v992_v47 = vmul.f32 0.17677669, %v968_v30  ;;  %v1312_v53 = vsel %vm440_vm5, %v1311_v25, %v1310_v31  ;;  %v1317_v8 = vrot.slane %v1258_v58, 1  ;;  %v830_v30 = vld [vmem:[#allocation2 + $0x8] sm:$0xff] }
 0x140   : > { %v1314_v57 = vsel %vm443_vm6, %v1313_v42, %v1312_v53 }
 0x141   : > { %v1013_v3 = vrot.slane %v992_v47, 1 }
 0x1c4   : > { %v552_v61 = vpop.xlane.xlu0 %551 }
 0x1c5   : > { %v2733_v62 = vmax.f32 %v2730_v60, %v552_v61  ;;  %v721_v61 = vrot.slane %v705_v43, 6  ;;  %v1003_v43 = vrot.slane %v987_v22, 6  ;;  %v1248_v22 = vld [vmem:[%s2641_s10 + $0x17] sm:$0x1] }
 0x1c6   : > { %v1272_v40 = vmul.f32 0.17677669, %v1248_v22 }
 0x1c7   : > { %v554_v63 = vsub.f32 %v2730_v60, %v2733_v62  ;;  %678 = vst.msk [vmem:[#allocation2] sm:$0xff] %vm375_vm9, %v2733_v62  ;;  %559 = vperm.xlu0 %2206, %v2733_v62   ;;  %v1004_v28 = vsel %vm434_vm3, %v1003_v43, %v1002_v48  ;;  %v1289_v43 = vrot.slane %v1271_v23, 4 }
 0x1c8   : > { %v1291_v1 = vrot.slane %v1272_v40, 3 }
 0x242   : > { %v560_v13 = vpop.permute.xlu0 %559 }
 0x243   : > { %v562_v20 = vsub.f32 %v2726_v56, %v560_v13  ;;  %v722_v56 = vsel %vm434_vm3, %v721_v61, %v720_v15  ;;  %v989_v61 = vmul.f32 0.17677669, %v965_v39  ;;  %v752_v13 = vsel %vm446_vm7, %v751_v44, %v750_v52  ;;  %v1249_v39 = vld [vmem:[%s2641_s10 + $0x1b] sm:$0x1] }
 0x244   : > { %v724_v2 = vsel %vm437_vm4, %v723_v5, %v722_v56  ;;  %v967_v5 = vld [vmem:[%s2641_s10 + $0x1a] sm:$0x1]  ;;  %v990_v15 = vmul.f32 0.17677669, %v966_v59  ;;  %v1006_v44 = vsel %vm437_vm4, %v1005_v4, %v1004_v28  ;;  %v754_v27 = vsel %vm449_vm8, %v753_v45, %v752_v13 }
 0x245   : > { %v563_v29 = vmul.f32 1.442695, %v562_v20  ;;  %v726_v19 = vsel %vm440_vm5, %v725_v9, %v724_v2  ;;  %v1031_v20 = vrot.slane %v974_v55, 3  ;;  %v1007_v21 = vrot.slane %v989_v61, 4 }
 0x246   : > { %v991_v9 = vmul.f32 0.17677669, %v967_v5  ;;  %v728_v33 = vsel %vm443_vm6, %v727_v10, %v726_v19  ;;  %v1009_v56 = vrot.slane %v990_v15, 3  ;;  %v1288_v10 = vsel %vm437_vm4, %v1287_v26, %v1286_v32  ;;  %v1112_v32 = vld [vmem:[#allocation2 + $0x10] sm:$0xff] }
 0x247   : > { %2208 = vpow2.f32 %v563_v29  ;;  %v976_v29 = vld [vmem:[%s2649_s7 + $0x1e] sm:$0x1]  ;;  %v1032_v35 = vsel %vm443_vm6, %v1031_v20, %v1030_v34  ;;  %v1008_v45 = vsel %vm440_vm5, %v1007_v21, %v1006_v44  ;;  %v730_v48 = vsel %vm446_vm7, %v729_v16, %v728_v33 }
 0x248   : > { %v1035_v49 = vrot.slane %v976_v29, 1  ;;  %v1011_v50 = vrot.slane %v991_v9, 2  ;;  %v1273_v51 = vmul.f32 0.17677669, %v1249_v39  ;;  %v1034_v55 = vsel %vm446_vm7, %v1033_v36, %v1032_v35  ;;  %v2920_v36 = vld [vmem:[#allocation2 + $0x18] sm:$0xff] }
 0x249   : > { %v1010_v59 = vsel %vm443_vm6, %v1009_v56, %v1008_v45  ;;  %v1315_v61 = vrot.slane %v1257_v41, 2  ;;  %v1290_v16 = vsel %vm440_vm5, %v1289_v43, %v1288_v10  ;;  %v732_v2 = vsel %vm449_vm8, %v731_v46, %v730_v48  ;;  %v696_v56 = vld [vmem:[%s2656_s12 + $0x5] sm:$0x1]  ;;  %v697_v39 = vld [vmem:[%s2656_s12 + $0x9] sm:$0x1] }
 0x24a   : > { %v1274_v4 = vmul.f32 0.17677669, %v1250_v37  ;;  %v1036_v6 = vsel %vm449_vm8, %v1035_v49, %v1034_v55  ;;  %v1012_v7 = vsel %vm446_vm7, %v1011_v50, %v1010_v59  ;;  %v1293_v28 = vrot.slane %v1273_v51, 2  ;;  %v695_v45 = vld [vmem:[%s2656_s12 + $0x1] sm:$0x1] }
 0x24b   : > { %v1316_v11 = vsel %vm446_vm7, %v1315_v61, %v1314_v57  ;;  %v1292_v38 = vsel %vm443_vm6, %v1291_v1, %v1290_v16  ;;  %v1014_v12 = vsel %vm449_vm8, %v1013_v3, %v1012_v7  ;;  %v870_v40 = vrot.slane %v696_v56, 7  ;;  %v698_v41 = vld [vmem:[%s2656_s12 + $0xd] sm:$0x1]  ;;  %v699_v46 = vld [vmem:[%s2656_s12 + $0x11] sm:$0x1] }
 0x24c   : > { %v1295_v13 = vrot.slane %v1274_v4, 1  ;;  %v1318_v14 = vsel %vm449_vm8, %v1317_v8, %v1316_v11  ;;  %v1294_v5 = vsel %vm446_vm7, %v1293_v28, %v1292_v38  ;;  %v872_v42 = vrot.slane %v697_v39, 6  ;;  %v700_v10 = vld [vmem:[%s2656_s12 + $0x15] sm:$0x1]  ;;  %v701_v37 = vld [vmem:[%s2656_s12 + $0x19] sm:$0x1] }
 0x24d   : > { %v871_v47 = vsel %vm431_vm2, %v870_v40, %v695_v45  ;;  %v874_v53 = vrot.slane %v698_v41, 5  ;;  %v876_v49 = vrot.slane %v699_v46, 4  ;;  %v702_v51 = vld [vmem:[%s2656_s12 + $0x1d] sm:$0x1]  ;;  %v878_v59 = vrot.slane %v700_v10, 3 }
 0x24e   : > { %v1296_v15 = vsel %vm449_vm8, %v1295_v13, %v1294_v5  ;;  %v873_v48 = vsel %vm434_vm3, %v872_v42, %v871_v47  ;;  %v880_v61 = vrot.slane %v701_v37, 2  ;;  %v882_v1 = vrot.slane %v702_v51, 1  ;;  %v978_v38 = vld [vmem:[%s2656_s12 + $0x6] sm:$0x1]  ;;  %v980_v5 = vld [vmem:[%s2656_s12 + $0xe] sm:$0x1] }
 0x24f   : > { %v875_v55 = vsel %vm437_vm4, %v874_v53, %v873_v48  ;;  %v1152_v13 = vrot.slane %v978_v38, 7  ;;  %v1263_v39 = vld [vmem:[%s2656_s12 + $0x13] sm:$0x1]  ;;  %v983_v41 = vld [vmem:[%s2656_s12 + $0x1a] sm:$0x1] }
 0x250   : > { %v877_v58 = vsel %vm440_vm5, %v876_v49, %v875_v55  ;;  %v1264_v53 = vld [vmem:[%s2656_s12 + $0x17] sm:$0x1]  ;;  %v1440_v10 = vrot.slane %v1263_v39, 4  ;;  %v984_v49 = vld [vmem:[%s2656_s12 + $0x1e] sm:$0x1]  ;;  %v1162_v37 = vrot.slane %v983_v41, 2 }
 0x251   : > { %v879_v57 = vsel %vm443_vm6, %v878_v59, %v877_v58  ;;  %v1265_v59 = vld [vmem:[%s2656_s12 + $0x1b] sm:$0x1]  ;;  %v1442_v58 = vrot.slane %v1264_v53, 3 }
 0x252   : > { %v881_v16 = vsel %vm446_vm7, %v880_v61, %v879_v57 }
 0x254   : > { %v2870_v52 = vpop.eup %2208 }
 0x255   : > { %2082 = vmatmul.mubr.msk.f32.vlgmr.msra.gmra.mxu1 %vm549_vm10, %v2870_v52  ;;  %v567_v7 = vsel %vm549_vm10, %v2870_v52, 0.0  ;;  %v977_v52 = vld [vmem:[%s2656_s12 + $0x2] sm:$0x1] }
 0x256   : > { %2085 = vmatpush3.xpose.msk.msra.mxu1 %vm384_vm0, %v754_v27  ;;  %2086 = vmatprep.mubr.msk.f32.mxu1 %vm2439_vm1, %v2438_v0 }
 0x257   : > { %2094 = vmatprep.subr.mxu1 %v2438_v0 }
 0x259   : > { %2087 = vmatmul.mubr.msk.f32.vlgmr.msra.gmra.mxu1 %vm384_vm0, %v732_v2  ;;  %v883_v2 = vsel %vm449_vm8, %v882_v1, %v881_v16  ;;  %v1164_v1 = vrot.slane %v984_v49, 1  ;;  %v1266_v16 = vld [vmem:[%s2656_s12 + $0x1f] sm:$0x1] }
 0x25a   : > { %2095 = vmatpush3.xpose.msk.msra.mxu1 %vm384_vm0, %v1036_v6  ;;  %2096 = vmatprep.mubr.msk.f32.mxu1 %vm2439_vm1, %v2438_v0 }
 0x25b   : > { %2104 = vmatprep.subr.mxu1 %v2438_v0  ;;  %2090 = vmatpush3.msra.mxu0 %v883_v2  ;;  %v1444_v2 = vrot.slane %v1265_v59, 2 }
 0x25c   : > { %2099 = vmatprep.subr.mxu0 %v2438_v0 }
 0x25d   : > { %2097 = vmatmul.mubr.msk.f32.vlgmr.msra.gmra.mxu1 %vm384_vm0, %v1014_v12  ;;  %v979_v12 = vld [vmem:[%s2656_s12 + $0xa] sm:$0x1] }
 0x25e   : > { %2105 = vmatpush3.xpose.msk.msra.mxu1 %vm384_vm0, %v1318_v14  ;;  %2106 = vmatprep.mubr.msk.f32.mxu1 %vm2439_vm1, %v2438_v0  ;;  %v1260_v14 = vld [vmem:[%s2656_s12 + $0x7] sm:$0x1] }
 0x261   : > { %2107 = vmatmul.mubr.msk.f32.vlgmr.msra.gmra.mxu1 %vm384_vm0, %v1296_v15  ;;  %v1154_v15 = vrot.slane %v979_v12, 6 }
 0x315   : > { %v2902_v17 = vpop.f32.mrf.mxu1 }
 0x317   : > { %v2083_v18 = vpop.f32.mrf.mxu1 }
 0x318   : > { %v1153_v18 = vsel %vm431_vm2, %v1152_v13, %v977_v52 }
 0x319   : > { %v825_v19 = vpop.f32.mrf.mxu1 }
 0x31a   : > { %v2905_v20 = vadd.f32 %v825_v19, %v2723_v54  ;;  %v1261_v19 = vld [vmem:[%s2656_s12 + $0xb] sm:$0x1] }
 0x31b   : > { %v2088_v21 = vpop.f32.mrf.mxu1 }
 0x31c   : > { %v831_v22 = vsel %vm549_vm10, %v2905_v20, -inf  ;;  %v1434_v21 = vrot.slane %v1260_v14, 7 }
 0x31d   : > { %832 = vmax.xlane.f32.xlu1 %v831_v22  ;;  %v1107_v23 = vpop.f32.mrf.mxu1 }
 0x31e   : > { %v2910_v34 = vadd.f32 %v1107_v23, %v2723_v54  ;;  %v1259_v23 = vld [vmem:[%s2656_s12 + $0x3] sm:$0x1] }
 0x31f   : > { %v2098_v44 = vpop.f32.mrf.mxu1 }
 0x320   : > { %v1113_v24 = vsel %vm549_vm10, %v2910_v34, -inf }
 0x321   : > { %1114 = vmax.xlane.f32.xlu1 %v1113_v24  ;;  %v1389_v25 = vpop.f32.mrf.mxu1  ;;  %v981_v24 = vld [vmem:[%s2656_s12 + $0x12] sm:$0x1] }
 0x322   : > { %v2915_v26 = vadd.f32 %v1389_v25, %v2723_v54  ;;  %v1156_v25 = vrot.slane %v980_v5, 5  ;;  %v555_v5 = vmul.f32 1.442695, %v554_v63 }
 0x323   : > { %v2108_v27 = vpop.f32.mrf.mxu1 }
 0x324   : > { %v1395_v29 = vsel %vm549_vm10, %v2915_v26, -inf  ;;  %v1155_v27 = vsel %vm434_vm3, %v1154_v15, %v1153_v18 }
 0x325   : > { %1396 = vmax.xlane.f32.xlu1 %v1395_v29  ;;  %v1262_v29 = vld [vmem:[%s2656_s12 + $0xf] sm:$0x1] }
 0x326   : > { %v1438_v40 = vrot.slane %v1262_v29, 5 }
 0x3a6   : > { %v833_v9 = vpop.xlane.xlu1 %832 }
 0x3a7   : > { %v834_v31 = vmax.f32 %v830_v30, %v833_v9 }
 0x3a9   : > { %960 = vst.msk [vmem:[#allocation2 + $0x8] sm:$0xff] %vm375_vm9, %v834_v31  ;;  %840 = vperm.xlu1 %2207, %v834_v31   ;;  %v835_v3 = vsub.f32 %v830_v30, %v834_v31  ;;  %v1436_v30 = vrot.slane %v1261_v19, 6  ;;  %v1435_v31 = vsel %vm431_vm2, %v1434_v21, %v1259_v23 }
 0x3aa   : > { %v1115_v33 = vpop.xlane.xlu1 %1114 }
 0x3ab   : > { %v1116_v54 = vmax.f32 %v1112_v32, %v1115_v33  ;;  %v836_v4 = vmul.f32 1.442695, %v835_v3  ;;  %v982_v33 = vld [vmem:[%s2656_s12 + $0x16] sm:$0x1] }
 0x3ac   : > { %v1160_v42 = vrot.slane %v982_v33, 3 }
 0x3ad   : > { %1242 = vst.msk [vmem:[#allocation2 + $0x10] sm:$0xff] %vm375_vm9, %v1116_v54  ;;  %1122 = vperm.xlu1 %2207, %v1116_v54   ;;  %v1117_v6 = vsub.f32 %v1112_v32, %v1116_v54  ;;  %2210 = vpow2.f32 %v836_v4  ;;  %v1158_v54 = vrot.slane %v981_v24, 4  ;;  %v1446_v4 = vrot.slane %v1266_v16, 1 }
 0x3ae   : > { %v1397_v35 = vpop.xlane.xlu1 %1396 }
 0x3af   : > { %v2928_v43 = vmax.f32 %v2920_v36, %v1397_v35  ;;  %v1118_v8 = vmul.f32 1.442695, %v1117_v6  ;;  %v1437_v35 = vsel %vm434_vm3, %v1436_v30, %v1435_v31 }
 0x3b1   : > { %v1399_v50 = vsub.f32 %v2920_v36, %v2928_v43  ;;  %1524 = vst.msk [vmem:[#allocation2 + $0x18] sm:$0xff] %vm375_vm9, %v2928_v43  ;;  %1404 = vperm.xlu1 %2207, %v2928_v43   ;;  %2212 = vpow2.f32 %v1118_v8  ;;  %v847_v36 = vld [vmem:[#allocation3 + $0x8] sm:$0xff] }
 0x3b3   : > { %v1400_v15 = vmul.f32 1.442695, %v1399_v50 }
 0x3ba   : > { %v2949_v28 = vpop.eup %2210 }
 0x3bb   : > { %v848_v43 = vmul.f32 %v2949_v28, %v847_v36 }
 0x3be   : > { %v2952_v11 = vpop.eup %2212 }
 0x3d5   : > { %568 = vadd.xlane.f32.xlu1 %v567_v7 }
 0x3e6   : > { %858 = vperm.xlu1 %2207, %v2949_v28   ;;  %v573_v28 = vld [vmem:[#allocation4] sm:$0xff] }
 0x3ea   : > { %1140 = vperm.xlu1 %2207, %v2952_v11  }
 0x424   : > { %v841_v22 = vpop.permute.xlu1 %840 }
 0x425   : > { %v843_v44 = vsub.f32 %v2905_v20, %v841_v22  ;;  %v1157_v20 = vsel %vm437_vm4, %v1156_v25, %v1155_v27  ;;  %v1129_v25 = vld [vmem:[#allocation3 + $0x10] sm:$0xff] }
 0x426   : > { %v1159_v47 = vsel %vm440_vm5, %v1158_v54, %v1157_v20  ;;  %v1130_v29 = vmul.f32 %v2952_v11, %v1129_v25 }
 0x427   : > { %v844_v9 = vmul.f32 1.442695, %v843_v44  ;;  %v1161_v55 = vsel %vm443_vm6, %v1160_v42, %v1159_v47 }
 0x428   : > { %v1123_v32 = vpop.permute.xlu1 %1122  ;;  %v1163_v57 = vsel %vm446_vm7, %v1162_v37, %v1161_v55 }
 0x429   : > { %2214 = vpow2.f32 %v844_v9  ;;  %v1125_v56 = vsub.f32 %v2910_v34, %v1123_v32  ;;  %v1439_v34 = vsel %vm437_vm4, %v1438_v40, %v1437_v35  ;;  %v1411_v9 = vld [vmem:[#allocation3 + $0x18] sm:$0xff] }
 0x42a   : > { %v1441_v61 = vsel %vm440_vm5, %v1440_v10, %v1439_v34 }
 0x42b   : > { %v1126_v45 = vmul.f32 1.442695, %v1125_v56  ;;  %v1443_v3 = vsel %vm443_vm6, %v1442_v58, %v1441_v61  ;;  %v1545_v58 = vlaneseq  ;;  %v855_v61 = vld [vmem:[#allocation4 + $0x8] sm:$0xff] }
 0x42c   : > { %v1405_v46 = vpop.permute.xlu1 %1404  ;;  %v1445_v7 = vsel %vm446_vm7, %v1444_v2, %v1443_v3  ;;  %v1137_v3 = vld [vmem:[#allocation4 + $0x10] sm:$0xff] }
 0x42d   : > { %2216 = vpow2.f32 %v1126_v45  ;;  %v1407_v48 = vsub.f32 %v2915_v26, %v1405_v46  ;;  %v1165_v26 = vsel %vm449_vm8, %v1164_v1, %v1163_v57  ;;  %v1447_v38 = vsel %vm449_vm8, %v1446_v4, %v1445_v7 }
 0x42e   : > { %v1546_v57 = vshrl.u32 %v1545_v58, 7 }
 0x42f   : > { %v1408_v51 = vmul.f32 1.442695, %v1407_v48 }
 0x431   : > { %2218 = vpow2.f32 %v1408_v51 }
 0x432   : > { %2220 = vpow2.f32 %v555_v5 }
 0x433   : > { %2222 = vpow2.f32 %v1400_v15 }
 0x436   : > { %v2215_v6 = vpop.eup %2214 }
 0x437   : > { %2092 = vmatmul.mubr.msk.f32.vlgmr.msra.gmra.mxu0 %vm549_vm10, %v2215_v6  ;;  %v849_v8 = vsel %vm549_vm10, %v2215_v6, 0.0 }
 0x438   : > { %850 = vadd.xlane.f32.xlu0 %v849_v8  ;;  %2100 = vmatpush3.msra.mxu0 %v1165_v26 }
 0x439   : > { %2101 = vmatprep.mubr.msk.f32.mxu0 %vm2439_vm1, %v2438_v0  ;;  %2109 = vmatprep.subr.mxu0 %v2438_v0 }
 0x43a   : > { %v2217_v12 = vpop.eup %2216 }
 0x43b   : > { %2102 = vmatmul.mubr.msk.f32.vlgmr.msra.gmra.mxu0 %vm549_vm10, %v2217_v12  ;;  %v1131_v13 = vsel %vm549_vm10, %v2217_v12, 0.0 }
 0x43c   : > { %1132 = vadd.xlane.f32.xlu0 %v1131_v13  ;;  %2110 = vmatpush3.msra.mxu0 %v1447_v38 }
 0x43d   : > { %2111 = vmatprep.mubr.msk.f32.mxu0 %vm2439_vm1, %v2438_v0  ;;  %v565_v0 = vld [vmem:[#allocation3] sm:$0xff] }
 0x43e   : > { %v2219_v52 = vpop.eup %2218 }
 0x43f   : > { %2112 = vmatmul.mubr.msk.f32.vlgmr.msra.gmra.mxu0 %vm549_vm10, %v2219_v52  ;;  %v1413_v14 = vsel %vm549_vm10, %v2219_v52, 0.0  ;;  %v2221_v18 = vpop.eup %2220  ;;  %v1419_v52 = vld [vmem:[#allocation4 + $0x18] sm:$0xff] }
 0x440   : > { %1414 = vadd.xlane.f32.xlu0 %v1413_v14  ;;  %v2223_v19 = vpop.eup %2222  ;;  %v566_v21 = vmul.f32 %v2221_v18, %v565_v0 }
 0x441   : > { %v1412_v32 = vmul.f32 %v2223_v19, %v1411_v9 }
 0x456   : > { %576 = vperm.xlu0 %2206, %v2221_v18  }
 0x45a   : > { %1422 = vperm.xlu0 %2206, %v2223_v19  }
 0x45e   : > { %v569_v22 = vpop.xlane.xlu1 %568 }
 0x45f   : > { %v570_v23 = vadd.f32 %v569_v22, %v566_v21 }
 0x461   : > { %572 = vst.msk [vmem:[#allocation3] sm:$0xff] %vm375_vm9, %v570_v23 }
 0x462   : > { %v859_v55 = vpop.permute.xlu1 %858 }
 0x463   : > { %v861_v2 = vmul.f32 %v859_v55, %v855_v61 }
 0x466   : > { %v1141_v16 = vpop.permute.xlu1 %1140 }
 0x467   : > { %v1143_v13 = vmul.f32 %v1141_v16, %v1137_v3 }
 0x468   : > { %v1528_v44 = vld [vmem:[#allocation3] sm:$0xff] }
 0x469   : > { %2224 = vrcp.f32 %v1528_v44 }
 0x476   : > { %v2225_v60 = vpop.eup %2224 }
 0x477   : > { %v1530_v62 = vmul.f32 %v2225_v60, %v1528_v44 }
 0x479   : > { %v1531_v63 = vsub.f32 2.0, %v1530_v62 }
 0x47b   : > { %v1532_v24 = vmul.f32 %v2225_v60, %v1531_v63 }
 0x47d   : > { %1536 = vperm.xlu1 %2207, %v1532_v24  }
 0x4c1   : > { %v851_v50 = vpop.xlane.xlu0 %850 }
 0x4c2   : > { %v852_v27 = vadd.f32 %v851_v50, %v848_v43 }
 0x4c4   : > { %853 = vst.msk [vmem:[#allocation3 + $0x8] sm:$0xff] %vm375_vm9, %v852_v27 }
 0x4c5   : > { %v1133_v30 = vpop.xlane.xlu0 %1132 }
 0x4c6   : > { %v1134_v31 = vadd.f32 %v1133_v30, %v1130_v29 }
 0x4c8   : > { %1135 = vst.msk [vmem:[#allocation3 + $0x10] sm:$0xff] %vm375_vm9, %v1134_v31 }
 0x4c9   : > { %v1415_v33 = vpop.xlane.xlu0 %1414 }
 0x4ca   : > { %v1416_v54 = vadd.f32 %v1415_v33, %v1412_v32 }
 0x4cb   : > { %v1607_v56 = vld [vmem:[#allocation3 + $0x8] sm:$0xff] }
 0x4cc   : > { %1417 = vst.msk [vmem:[#allocation3 + $0x18] sm:$0xff] %vm375_vm9, %v1416_v54  ;;  %2226 = vrcp.f32 %v1607_v56 }
 0x4cf   : > { %v1685_v20 = vld [vmem:[#allocation3 + $0x10] sm:$0xff] }
 0x4d0   : > { %2228 = vrcp.f32 %v1685_v20 }
 0x4d1   : > { %v577_v39 = vpop.permute.xlu0 %576 }
 0x4d2   : > { %v579_v40 = vmul.f32 %v577_v39, %v573_v28 }
 0x4d3   : > { %v1763_v35 = vld [vmem:[#allocation3 + $0x18] sm:$0xff] }
 0x4d4   : > { %v676_v11 = vadd.f32 %v2902_v17, %v579_v40  ;;  %2230 = vrcp.f32 %v1763_v35  ;;  %v2442_v17 = vmov 1966171168  }
 0x4d5   : > { %v1543_v59 = vunpack.c.l.s4 %v2442_v17  ;;  %v1423_v14 = vpop.permute.xlu0 %1422 }
 0x4d6   : > { %677 = vst.msk [vmem:[#allocation4] sm:$0xff] %vm384_vm0, %v676_v11  ;;  %v1425_v44 = vmul.f32 %v1423_v14, %v1419_v52 }
 0x4d7   : > { %v1544_v1 = vunpack.c.0.s8 %v1543_v59 }
 0x4d9   : > { %v2227_v45 = vpop.eup %2226  ;;  %v3013_v4 = vsub.s32 %v1544_v1, %v1546_v57 }
 0x4da   : > { %v1609_v41 = vmul.f32 %v2227_v45, %v1607_v56 }
 0x4dc   : > { %v1610_v42 = vsub.f32 2.0, %v1609_v41 }
 0x4dd   : > { %v2229_v46 = vpop.eup %2228  ;;  %v1533_v7 = vld [vmem:[#allocation4] sm:$0xff] }
 0x4de   : > { %v1611_v47 = vmul.f32 %v2227_v45, %v1610_v42  ;;  %v1687_v53 = vmul.f32 %v2229_v46, %v1685_v20 }
 0x4e0   : > { %1615 = vperm.xlu1 %2207, %v1611_v47   ;;  %v1688_v10 = vsub.f32 2.0, %v1687_v53 }
 0x4e1   : > { %v2231_v48 = vpop.eup %2230 }
 0x4e2   : > { %v1689_v34 = vmul.f32 %v2229_v46, %v1688_v10  ;;  %v1765_v49 = vmul.f32 %v2231_v48, %v1763_v35 }
 0x4e4   : > { %1693 = vperm.xlu1 %2207, %v1689_v34   ;;  %v1766_v37 = vsub.f32 2.0, %v1765_v49 }
 0x4e6   : > { %v1767_v51 = vmul.f32 %v2231_v48, %v1766_v37 }
 0x4e8   : > { %1771 = vperm.xlu1 %2207, %v1767_v51  }
 0x4f7   : > { %v954_v26 = vpop.f32.mrf.mxu0 }
 0x4f8   : > { %v958_v6 = vadd.f32 %v954_v26, %v861_v2  ;;  %v1537_v8 = vpop.permute.xlu1 %1536 }
 0x4f9   : > { %v1539_v38 = vmul.f32 %v1537_v8, %v1533_v7  ;;  %v2093_v12 = vpop.f32.mrf.mxu0 }
 0x4fa   : > { %959 = vst.msk [vmem:[#allocation4 + $0x8] sm:$0xff] %vm384_vm0, %v958_v6 }
 0x4fb   : > { %v1541_v5 = vcombine.high %v1539_v38, %v1539_v38  ;;  %v1548_v15 = vrot.slane %v1539_v38, %v3013_v4  ;;  %v1236_v18 = vpop.f32.mrf.mxu0 }
 0x4fc   : > { %v1240_v19 = vadd.f32 %v1236_v18, %v1143_v13 }
 0x4fd   : > { %v1555_v0 = vrot.slane %v1541_v5, %v3013_v4  ;;  %v1556_v21 = vcombine.high %v1548_v15, %v1548_v15  ;;  %v1564_v22 = vrot.slane %v1548_v15, %v3013_v4  ;;  %v2103_v23 = vpop.f32.mrf.mxu0 }
 0x4fe   : > { %1241 = vst.msk [vmem:[#allocation4 + $0x10] sm:$0xff] %vm384_vm0, %v1240_v19 }
 0x4ff   : > { %v1557_v60 = vcombine.high %v1555_v0, %v1555_v0  ;;  %v1571_v62 = vrot.slane %v1555_v0, %v3013_v4  ;;  %v1578_v63 = vrot.slane %v1556_v21, %v3013_v4  ;;  %v1586_v24 = vcombine.high %v1564_v22, %v1564_v22  ;;  %1599 = vst.msk [vmem:[%s3023_s23] sm:$0x1] %vm1598_vm11, %v1564_v22  ;;  %v1518_v36 = vpop.f32.mrf.mxu0 }
 0x500   : > { %v1522_v43 = vadd.f32 %v1518_v36, %v1425_v44 }
 0x501   : > { %v1585_v50 = vrot.slane %v1557_v60, %v3013_v4  ;;  %v1587_v25 = vcombine.high %v1571_v62, %v1571_v62  ;;  %v1588_v27 = vcombine.high %v1578_v63, %v1578_v63  ;;  %1600 = vst.msk [vmem:[%s3023_s23 + $0x4] sm:$0x1] %vm1598_vm11, %v1578_v63  ;;  %1601 = vst.msk [vmem:[%s3023_s23 + $0x8] sm:$0x1] %vm1598_vm11, %v1586_v24  ;;  %v2113_v29 = vpop.f32.mrf.mxu0  ;;  %v1612_v9 = vld [vmem:[#allocation4 + $0x8] sm:$0xff] }
 0x502   : > { %1603 = vst.msk [vmem:[%s3023_s23 + $0x10] sm:$0x1] %vm1598_vm11, %v1571_v62 }
 0x503   : > { %1523 = vst.msk [vmem:[#allocation4 + $0x18] sm:$0xff] %vm384_vm0, %v1522_v43  ;;  %v1589_v30 = vcombine.high %v1585_v50, %v1585_v50 }
 0x504   : > { %1602 = vst.msk [vmem:[%s3023_s23 + $0xc] sm:$0x1] %vm1598_vm11, %v1588_v27  ;;  %1604 = vst.msk [vmem:[%s3023_s23 + $0x14] sm:$0x1] %vm1598_vm11, %v1585_v50 }
 0x505   : > { %1605 = vst.msk [vmem:[%s3023_s23 + $0x18] sm:$0x1] %vm1598_vm11, %v1587_v25  ;;  %1606 = vst.msk [vmem:[%s3023_s23 + $0x1c] sm:$0x1] %vm1598_vm11, %v1589_v30  ;;  %v1690_v56 = vld [vmem:[#allocation4 + $0x10] sm:$0xff] }
 0x50a   : > { %v1768_v53 = vld [vmem:[#allocation4 + $0x18] sm:$0xff] }
 0x55b   : > { %v1616_v31 = vpop.permute.xlu1 %1615 }
 0x55c   : > { %v1618_v32 = vmul.f32 %v1616_v31, %v1612_v9 }
 0x55e   : > { %v1620_v33 = vcombine.high %v1618_v32, %v1618_v32  ;;  %v1627_v54 = vrot.slane %v1618_v32, %v3013_v4 }
 0x55f   : > { %v1694_v28 = vpop.permute.xlu1 %1693 }
 0x560   : > { %v1634_v20 = vrot.slane %v1620_v33, %v3013_v4  ;;  %v1635_v39 = vcombine.high %v1627_v54, %v1627_v54  ;;  %v1643_v40 = vrot.slane %v1627_v54, %v3013_v4  ;;  %v1696_v35 = vmul.f32 %v1694_v28, %v1690_v56 }
 0x562   : > { %v1636_v11 = vcombine.high %v1634_v20, %v1634_v20  ;;  %v1650_v45 = vrot.slane %v1634_v20, %v3013_v4  ;;  %v1657_v41 = vrot.slane %v1635_v39, %v3013_v4  ;;  %v1665_v42 = vcombine.high %v1643_v40, %v1643_v40  ;;  %1677 = vst.msk [vmem:[%s3023_s23 + $0x1] sm:$0x1] %vm1598_vm11, %v1643_v40 }
 0x563   : > { %v1698_v46 = vcombine.high %v1696_v35, %v1696_v35  ;;  %v1705_v47 = vrot.slane %v1696_v35, %v3013_v4  ;;  %v1772_v10 = vpop.permute.xlu1 %1771 }
 0x564   : > { %v1664_v48 = vrot.slane %v1636_v11, %v3013_v4  ;;  %v1666_v34 = vcombine.high %v1650_v45, %v1650_v45  ;;  %v1667_v49 = vcombine.high %v1657_v41, %v1657_v41  ;;  %1678 = vst.msk [vmem:[%s3023_s23 + $0x5] sm:$0x1] %vm1598_vm11, %v1657_v41  ;;  %1679 = vst.msk [vmem:[%s3023_s23 + $0x9] sm:$0x1] %vm1598_vm11, %v1665_v42 }
 0x565   : > { %1681 = vst.msk [vmem:[%s3023_s23 + $0x11] sm:$0x1] %vm1598_vm11, %v1650_v45  ;;  %v1774_v37 = vmul.f32 %v1772_v10, %v1768_v53  ;;  %v1712_v51 = vrot.slane %v1698_v46, %v3013_v4  ;;  %v1713_v55 = vcombine.high %v1705_v47, %v1705_v47  ;;  %v1721_v17 = vrot.slane %v1705_v47, %v3013_v4 }
 0x566   : > { %v1668_v59 = vcombine.high %v1664_v48, %v1664_v48  ;;  %1680 = vst.msk [vmem:[%s3023_s23 + $0xd] sm:$0x1] %vm1598_vm11, %v1667_v49  ;;  %1682 = vst.msk [vmem:[%s3023_s23 + $0x15] sm:$0x1] %vm1598_vm11, %v1664_v48 }
 0x567   : > { %1683 = vst.msk [vmem:[%s3023_s23 + $0x19] sm:$0x1] %vm1598_vm11, %v1666_v34  ;;  %v1776_v58 = vcombine.high %v1774_v37, %v1774_v37  ;;  %v1783_v61 = vrot.slane %v1774_v37, %v3013_v4  ;;  %v1714_v1 = vcombine.high %v1712_v51, %v1712_v51  ;;  %v1728_v57 = vrot.slane %v1712_v51, %v3013_v4 }
 0x568   : > { %v1735_v16 = vrot.slane %v1713_v55, %v3013_v4  ;;  %v1743_v2 = vcombine.high %v1721_v17, %v1721_v17  ;;  %1755 = vst.msk [vmem:[%s3023_s23 + $0x2] sm:$0x1] %vm1598_vm11, %v1721_v17  ;;  %1684 = vst.msk [vmem:[%s3023_s23 + $0x1d] sm:$0x1] %vm1598_vm11, %v1668_v59 }
 0x569   : > { %v1790_v3 = vrot.slane %v1776_v58, %v3013_v4  ;;  %v1791_v26 = vcombine.high %v1783_v61, %v1783_v61  ;;  %v1799_v6 = vrot.slane %v1783_v61, %v3013_v4  ;;  %v1742_v7 = vrot.slane %v1714_v1, %v3013_v4  ;;  %1759 = vst.msk [vmem:[%s3023_s23 + $0x12] sm:$0x1] %vm1598_vm11, %v1728_v57 }
 0x56a   : > { %v1744_v8 = vcombine.high %v1728_v57, %v1728_v57  ;;  %v1745_v38 = vcombine.high %v1735_v16, %v1735_v16  ;;  %1756 = vst.msk [vmem:[%s3023_s23 + $0x6] sm:$0x1] %vm1598_vm11, %v1735_v16  ;;  %1757 = vst.msk [vmem:[%s3023_s23 + $0xa] sm:$0x1] %vm1598_vm11, %v1743_v2 }
 0x56b   : > { %v1792_v12 = vcombine.high %v1790_v3, %v1790_v3  ;;  %v1806_v13 = vrot.slane %v1790_v3, %v3013_v4  ;;  %v1813_v52 = vrot.slane %v1791_v26, %v3013_v4  ;;  %v1821_v14 = vcombine.high %v1799_v6, %v1799_v6  ;;  %1833 = vst.msk [vmem:[%s3023_s23 + $0x3] sm:$0x1] %vm1598_vm11, %v1799_v6 }
 0x56c   : > { %v1746_v5 = vcombine.high %v1742_v7, %v1742_v7  ;;  %1758 = vst.msk [vmem:[%s3023_s23 + $0xe] sm:$0x1] %vm1598_vm11, %v1745_v38  ;;  %1760 = vst.msk [vmem:[%s3023_s23 + $0x16] sm:$0x1] %vm1598_vm11, %v1742_v7 }
 0x56d   : > { %1761 = vst.msk [vmem:[%s3023_s23 + $0x1a] sm:$0x1] %vm1598_vm11, %v1744_v8  ;;  %v1820_v15 = vrot.slane %v1792_v12, %v3013_v4  ;;  %v1822_v18 = vcombine.high %v1806_v13, %v1806_v13  ;;  %v1823_v19 = vcombine.high %v1813_v52, %v1813_v52  ;;  %1834 = vst.msk [vmem:[%s3023_s23 + $0x7] sm:$0x1] %vm1598_vm11, %v1813_v52 }
 0x56e   : > { %1835 = vst.msk [vmem:[%s3023_s23 + $0xb] sm:$0x1] %vm1598_vm11, %v1821_v14  ;;  %1837 = vst.msk [vmem:[%s3023_s23 + $0x13] sm:$0x1] %vm1598_vm11, %v1806_v13 }
 0x56f   : > { %1762 = vst.msk [vmem:[%s3023_s23 + $0x1e] sm:$0x1] %vm1598_vm11, %v1746_v5  ;;  %v1824_v4 = vcombine.high %v1820_v15, %v1820_v15  ;;  %1836 = vst.msk [vmem:[%s3023_s23 + $0xf] sm:$0x1] %vm1598_vm11, %v1823_v19 }
 0x570   : > { %1838 = vst.msk [vmem:[%s3023_s23 + $0x17] sm:$0x1] %vm1598_vm11, %v1820_v15  ;;  %1839 = vst.msk [vmem:[%s3023_s23 + $0x1b] sm:$0x1] %vm1598_vm11, %v1822_v18 }
 0x571   : > { %1840 = vst.msk [vmem:[%s3023_s23 + $0x1f] sm:$0x1] %vm1598_vm11, %v1824_v4 }
 0x572   : > { %2355 = shalt.err (!%p2352_p6)
}
 0x573   : > { %s2356_s22 = scalar_lea.hbm %s3106_s1, 512  ;;  %s2360_s26 = scalar_lea.hbm %s3168_s4, 1024 }
 0x574   : > { %p2357_p9 = scmp.ne.s32.totalorder %s3106_s1, %s2356_s22  ;;  %p2361_p13 = scmp.lt.s32.totalorder %s3106_s1, %s3168_s4 }
 0x575   : > { %p2362_p7 = scmp.lt.s32.totalorder %s2360_s26, %s2356_s22 }
 0x576   : > { %p2358_p3 = pnand %p2357_p9, %p2567_p12 }
 0x577   : > { %p2363_p2 = por %p2362_p7, %p2361_p13 }
 0x578   : > { %p2359_p4 = pneg %p2358_p3 }
 0x57a   : > { %p2364_p11 = pnand %p2363_p2, %p2359_p4 }
 0x57c   : > { %2367 = shalt.err (!%p2364_p11)
}
 0x57d   : > { %s2444_s9 = smov 64   ;;  %s2445_s7 = smov 4  }
 0x57e   : > { %2124 = dma.vmem_to_hbm [thread:$0]  (%p2567_p12), %s3108_s29, 512, %s3106_s1, %s1842_s14, %s2444_s9, %s2444_s9, %s2445_s7  }
 0x57f PF: > { %s1873_s12 = sand.u32 1, %s2410_s15   ;;  %p3194_p10 = scmp.ne.s32.totalorder %s3185_s6, 0 }
 0x580   : > { %p3195_p0 = scmp.ge.s32.totalorder %s2430_s20, 2  ;;  %s1874_s23 = scalar_lea.sflag [#allocation7], %s1873_s12 }
 0x582   : > { %p2141_p8 = pnand %p3195_p0, %p3194_p10 }
 0x584   : > { %p2142_p5 = pneg %p2141_p8 }
 0x586   : > { %2405 = dma.done.wait (%p2142_p5), %s1874_s23, 512  }
 0x587   : > { %2407 = vsyncadd (%p2142_p5), %s1874_s23, 4294966784  ;;  %s24_s20 = sadd.s32 1, %s2430_s20   ;;  %s3196_s18 = sld [smem:[#allocation18_spill]] }
 0x588   : > { %p21_p1 = scmp.ge.s32.totalorder %s24_s20, 4   ;;  %s3197_s19 = sld [smem:[#allocation19_spill]] }
 0x589   : > { %s3198_s15 = smov %s2414_s16  ;;  %s3199_s16 = smov %s2418_s17 }
 0x58a   : > { %s3200_s17 = smov %s2528_s28  ;;  %23 = sbr.rel (!%p21_p1) target bundleno = 12 (0xc), region = 127 }
 0x58f   :  { %1879 = vsyncpa [#allocation6], 1 }
 0x590   :  { %1881 = vsyncpa [#allocation6 + $0x1], 1 }
 0x591   :  { %1882 = vsyncpa [#allocation9], 1 }
 0x592   :  { %1884 = vsyncpa [#allocation9 + $0x1], 1 }
 0x593   :  { %1885 = vsyncpa [#allocation12], 1 }
 0x594   :  { %1886 = vsyncpa [#allocation7], 1 }
 0x595   :  { %1888 = vsyncpa [#allocation7 + $0x1], 1 }

</bundles_post_ra>
